<compile_context>
chip_gen: v7x
topology: tpu7x:2x2x1
jax: 0.10.0
libtpu: 0.0.40
codegen_flags: <defaults>
</compile_context>

<pallas_src>
import functools

import jax
import jax.numpy as jnp
from jax.experimental import pallas as pl
from jax.experimental.pallas import tpu as pltpu


def _layernorm(x, gamma, beta, eps=1e-5):
    # x: (rows, C) f32, gamma/beta: (1, C) f32 — f32 elementwise throughout.
    mean = jnp.mean(x, axis=-1, keepdims=True)
    xc = x - mean
    var = jnp.mean(xc * xc, axis=-1, keepdims=True)
    inv = jax.lax.rsqrt(var + eps)
    return xc * inv * gamma + beta


def _block_kernel(num_heads, tq,
                  x_ref,
                  ln1_g_ref, ln1_b_ref,
                  wq_ref, wk_ref, wv_ref,
                  wproj_ref, bproj_ref,
                  ln2_g_ref, ln2_b_ref,
                  w1_ref, b1_ref,
                  w2_ref, b2_ref,
                  o_ref,
                  k_scr, v_scr):
    f32 = jnp.float32
    bf16 = jnp.bfloat16

    qt = pl.program_id(1)
    _, N, C = x_ref.shape
    hd = C // num_heads

    ln1_g = ln1_g_ref[...]
    ln1_b = ln1_b_ref[...]

    # K / V for the whole sequence: computed once per image and kept resident
    # in bf16 VMEM scratch across the query-tile iterations.
    @pl.when(qt == 0)
    def _():
        h_all = _layernorm(x_ref[0], ln1_g, ln1_b).astype(bf16)      # (N, C)
        k_scr[...] = jnp.dot(h_all, wk_ref[...],
                             preferred_element_type=f32).astype(bf16)
        v_scr[...] = jnp.dot(h_all, wv_ref[...],
                             preferred_element_type=f32).astype(bf16)

    row0 = pl.multiple_of(qt * tq, tq)
    xq = x_ref[0, pl.ds(row0, tq), :]                                # (tq, C) f32

    # ---- Attention branch (this query tile) ---------------------------------
    hq = _layernorm(xq, ln1_g, ln1_b).astype(bf16)
    # qk scale is folded into W_q in the wrapper; weights are already bf16.
    q_bf = jnp.dot(hq, wq_ref[...], preferred_element_type=f32).astype(bf16)
    k_bf = k_scr[...]                                                # (N, C) bf16
    v_bf = v_scr[...]

    # Contract last dims of q and k directly (q @ k^T without materializing
    # a transpose).
    dn = (((1,), (1,)), ((), ()))
    acc = jnp.zeros((tq, C), f32)
    for h in range(num_heads):
        sl = slice(h * hd, (h + 1) * hd)
        qh = q_bf[:, sl]                                             # (tq, hd)
        kh = k_bf[:, sl]                                             # (N, hd)
        vh = v_bf[:, sl]

        s = jax.lax.dot_general(qh, kh, dimension_numbers=dn,
                                preferred_element_type=f32)          # (tq, N)
        s = s - jnp.max(s, axis=-1, keepdims=True)
        p = jnp.exp(s)                                               # f32 (EUP)
        denom = jnp.sum(p, axis=-1, keepdims=True)                   # (tq, 1)

        oh = jnp.dot(p.astype(bf16), vh, preferred_element_type=f32)  # (tq, hd)
        # Normalize the small (tq, hd) epilogue with an approx reciprocal
        # (EUP slot) instead of dividing the (tq, N) score matrix on the VALU.
        oh = oh * pl.reciprocal(denom, approx=True)

        # Output projection folded into the head loop: lane-dense (tq, C)
        # accumulation (no (N, C) scratch slab, no masked sub-128 lane stores).
        acc = acc + jnp.dot(oh.astype(bf16), wproj_ref[h],
                            preferred_element_type=f32)

    x1 = xq + acc + bproj_ref[...]                                   # residual 1

    # ---- MLP branch ----------------------------------------------------------
    h2 = _layernorm(x1, ln2_g_ref[...], ln2_b_ref[...]).astype(bf16)
    h2 = jnp.dot(h2, w1_ref[...], preferred_element_type=f32) + b1_ref[...]
    # exact (erf-based) GELU, matching torch.nn.GELU default; f32 elementwise
    h2 = 0.5 * h2 * (1.0 + jax.lax.erf(h2 * 0.7071067811865476))
    h2 = jnp.dot(h2.astype(bf16), w2_ref[...],
                 preferred_element_type=f32) + b2_ref[...]

    o_ref[0] = (x1 + h2).astype(o_ref.dtype)


# ---------------------------------------------------------------------------
# Capability probes / generation-aware limits
# ---------------------------------------------------------------------------

def _probe_copy_kernel(x_ref, o_ref):
    o_ref[...] = x_ref[...]


@functools.lru_cache(maxsize=None)
def _single_buffered_weights_supported():
    """Probe whether this jax/Mosaic build accepts pl.Buffered(1) so
    grid-invariant weight inputs can be single-buffered."""
    try:
        x = jnp.zeros((8, 128), jnp.float32)
        out = pl.pallas_call(
            _probe_copy_kernel,
            out_shape=jax.ShapeDtypeStruct((16, 128), jnp.float32),
            grid=(2,),
            in_specs=[pl.BlockSpec((8, 128), lambda i: (0, 0),
                                   pipeline_mode=pl.Buffered(1))],
            out_specs=pl.BlockSpec((8, 128), lambda i: (i, 0)),
        )(x)
        jax.block_until_ready(out)
        return True
    except Exception:
        return False


@functools.lru_cache(maxsize=None)
def _vmem_limit_bytes():
    """~75% of per-core VMEM capacity (v5e/v6e: 128 MiB, v7x: 64 MiB),
    capped, with a conservative fallback."""
    try:
        cap = pltpu.get_tpu_info().vmem_capacity_bytes
        return min(int(0.75 * cap), 64 * 1024 * 1024)
    except Exception:
        return 32 * 1024 * 1024


# ---------------------------------------------------------------------------
# Wrapper
# ---------------------------------------------------------------------------

def vit_block(x, params, num_heads, *, q_tile=None):
    B, N, C = x.shape
    H = num_heads
    hd = C // H
    scale = hd ** (-0.5)
    Hdn = params['w1'].shape[1]
    bf16 = jnp.bfloat16

    # Query tiling: tq query rows per grid step (K/V are resident in scratch).
    # Falls back to one full-sequence tile when N is not a multiple of 128.
    if q_tile is None:
        q_tile = 128 if (N > 128 and N % 128 == 0) else N
    tq = q_tile
    assert N % tq == 0 and (tq == N or tq % 8 == 0)
    n_q_tiles = N // tq

    # Split the fused qkv weight into three aligned (C, C) matrices, fold the
    # attention scale into W_q, pre-cast all weights to bf16, and reshape the
    # projection weight to (H, hd, C) so it folds into the per-head loop.
    # (qkv_bias=False, the module default used here.)
    wqkv = params['wqkv']
    wq = (wqkv[:, 0 * C:1 * C] * scale).astype(bf16)
    wk = wqkv[:, 1 * C:2 * C].astype(bf16)
    wv = wqkv[:, 2 * C:3 * C].astype(bf16)
    wproj = params['wproj'].astype(bf16).reshape(H, hd, C)
    w1 = params['w1'].astype(bf16)
    w2 = params['w2'].astype(bf16)

    cost = pl.CostEstimate(
        flops=2 * B * N * C * (4 * C + 2 * N + 2 * Hdn),
        transcendentals=B * N * (H * N + Hdn + 2),
        bytes_accessed=(2 * B * N * C * 4                      # x in + out (f32)
                        + (4 * C * C + 2 * C * Hdn) * 2        # bf16 weights
                        + (6 * C + Hdn) * 4),                  # f32 biases / LN
    )

    # Grid-invariant weights: single-buffer them when supported (halves their
    # VMEM residency — matters for ViT-B/L against v7x's 64 MiB VMEM).
    wkw = ({'pipeline_mode': pl.Buffered(1)}
           if _single_buffered_weights_supported() else {})

    def wspec(shape):
        return pl.BlockSpec(shape, lambda b, q: tuple(0 for _ in shape), **wkw)

    def cspec(shape):
        return pl.BlockSpec(shape, lambda b, q: tuple(0 for _ in shape))

    kernel = functools.partial(_block_kernel, H, tq)
    return pl.pallas_call(
        kernel,
        out_shape=jax.ShapeDtypeStruct((B, N, C), x.dtype),
        grid=(B, n_q_tiles),
        in_specs=[
            pl.BlockSpec((1, N, C), lambda b, q: (b, 0, 0)),   # x (full sequence)
            cspec((1, C)), cspec((1, C)),                      # ln1 gamma, beta (f32)
            wspec((C, C)), wspec((C, C)), wspec((C, C)),       # wq (scaled), wk, wv (bf16)
            wspec((H, hd, C)), cspec((1, C)),                  # proj weight (bf16), bias (f32)
            cspec((1, C)), cspec((1, C)),                      # ln2 gamma, beta (f32)
            wspec((C, Hdn)), cspec((1, Hdn)),                  # fc1 weight (bf16), bias (f32)
            wspec((Hdn, C)), cspec((1, C)),                    # fc2 weight (bf16), bias (f32)
        ],
        out_specs=pl.BlockSpec((1, tq, C), lambda b, q: (b, q, 0)),
        scratch_shapes=[pltpu.VMEM((N, C), bf16),              # K (bf16, per image)
                        pltpu.VMEM((N, C), bf16)],             # V (bf16, per image)
        compiler_params=pltpu.CompilerParams(
            dimension_semantics=("parallel", "arbitrary"),
            vmem_limit_bytes=_vmem_limit_bytes()),
        cost_estimate=cost,
        input_output_aliases={0: 0},   # write the block output in place over x
    )(x,
      params['ln1_g'], params['ln1_b'],
      wq, wk, wv,
      wproj, params['bproj'],
      params['ln2_g'], params['ln2_b'],
      w1, params['b1'],
      w2, params['b2'])


# ---------------------------------------------------------------------------
# Pure-JAX reference + self-test
# ---------------------------------------------------------------------------

def vit_block_reference(x, params, num_heads):
    """Pure-JAX f32 reference mirroring the PyTorch forward (eval mode)."""
    B, N, C = x.shape
    hd = C // num_heads
    scale = hd ** (-0.5)

    def ln(v, g, b):
        m = jnp.mean(v, -1, keepdims=True)
        vc = v - m
        var = jnp.mean(vc * vc, -1, keepdims=True)
        return vc / jnp.sqrt(var + 1e-5) * g + b

    h = ln(x, params['ln1_g'], params['ln1_b'])
    qkv = h @ params['wqkv']                                   # (B, N, 3C)
    qkv = qkv.reshape(B, N, 3, num_heads, hd).transpose(2, 0, 3, 1, 4)
    q, k, v = qkv[0], qkv[1], qkv[2]                           # (B, H, N, hd)
    attn = jnp.einsum('bhnd,bhmd->bhnm', q, k) * scale
    attn = jax.nn.softmax(attn, axis=-1)
    out = jnp.einsum('bhnm,bhmd->bhnd', attn, v)
    out = out.transpose(0, 2, 1, 3).reshape(B, N, C)
    out = out @ params['wproj'] + params['bproj']
    x1 = x + out

    h2 = ln(x1, params['ln2_g'], params['ln2_b'])
    h2 = h2 @ params['w1'] + params['b1']
    h2 = jax.nn.gelu(h2, approximate=False)
    h2 = h2 @ params['w2'] + params['b2']
    return x1 + h2


def _make_params(key, C, mlp_hidden):
    keys = jax.random.split(key, 7)
    s = 0.02
    return dict(
        ln1_g=jnp.ones((1, C), jnp.float32),
        ln1_b=jnp.zeros((1, C), jnp.float32),
        wqkv=s * jax.random.normal(keys[0], (C, 3 * C), jnp.float32),
        wproj=s * jax.random.normal(keys[1], (C, C), jnp.float32),
        bproj=s * jax.random.normal(keys[2], (1, C), jnp.float32),
        ln2_g=jnp.ones((1, C), jnp.float32),
        ln2_b=jnp.zeros((1, C), jnp.float32),
        w1=s * jax.random.normal(keys[3], (C, mlp_hidden), jnp.float32),
        b1=s * jax.random.normal(keys[4], (1, mlp_hidden), jnp.float32),
        w2=s * jax.random.normal(keys[5], (mlp_hidden, C), jnp.float32),
        b2=s * jax.random.normal(keys[6], (1, C), jnp.float32),
    )


if __name__ == "__main__":
    key = jax.random.PRNGKey(0)

    # (B, N, C, num_heads): small single-tile case + a case exercising the
    # query-tiled grid path (n_q_tiles == 2).
    cases = [
        (2, 16, 64, 4),
        (2, 256, 128, 8),
    ]
    for (B, N, C, H) in cases:
        kx, kp, key = jax.random.split(key, 3)
        x = jax.random.normal(kx, (B, N, C), jnp.float32)
        params = _make_params(kp, C, 4 * C)

        # Compute the reference BEFORE the kernel call: input_output_aliases
        # donates x's buffer to the kernel output.
        ref = vit_block_reference(x, params, H)
        out = jax.block_until_ready(vit_block(x, params, H))

        assert out.shape == (B, N, C)
        max_diff = float(jnp.max(jnp.abs(out - ref)))
        # bf16 MXU operands (f32 accumulation) -> tolerance loosened vs pure-f32.
        assert jnp.allclose(out, ref, atol=2e-2, rtol=2e-2), \
            f"case {(B, N, C, H)}: max diff {max_diff}"

    print("KERNEL_OK")
</pallas_src>

<mosaic_0001>
module attributes {stable_mosaic.version = 11 : i64} {
  func.func @_probe_copy_kernel(%arg0: i32, %arg1: memref<8x128xf32, #tpu.memory_space<vmem>>, %arg2: memref<8x128xf32, #tpu.memory_space<vmem>>) attributes {dimension_semantics = [#tpu.dimension_semantics<arbitrary>], iteration_bounds = array<i64: 2>, scalar_prefetch = 0 : i64, scratch_operands = 0 : i64, tpu.core_type = #tpu.core_type<tc>, window_params = [{pipeline_mode = #tpu.pipeline_mode<synchronous>, transform_indices = @transform_0, window_bounds = array<i64: 8, 128>}, {transform_indices = @transform_1, window_bounds = array<i64: 8, 128>}]} {
    %c0 = arith.constant 0 : index
    %c0_0 = arith.constant 0 : index
    %0 = vector.load %arg1[%c0, %c0_0] : memref<8x128xf32, #tpu.memory_space<vmem>>, vector<8x128xf32>
    %c0_1 = arith.constant 0 : index
    %c0_2 = arith.constant 0 : index
    %1 = vector.load %arg2[%c0_1, %c0_2] : memref<8x128xf32, #tpu.memory_space<vmem>>, vector<8x128xf32>
    tpu.vector_store %arg2[%c0_1, %c0_2], %0 {strides = array<i32>} : memref<8x128xf32, #tpu.memory_space<vmem>>, vector<8x128xf32>,
    return
  }
  func.func @transform_0(%arg0: i32) -> (i32, i32) {
    %c0_i32 = arith.constant 0 : i32
    %c0_i32_0 = arith.constant 0 : i32
    %c0_i32_1 = arith.constant 0 : i32
    return %c0_i32, %c0_i32_0 : i32, i32
  }
  func.func @transform_1(%arg0: i32) -> (i32, i32) {
    %c0_i32 = arith.constant 0 : i32
    %c0_i32_0 = arith.constant 0 : i32
    return %arg0, %c0_i32 : i32, i32
  }
}

module attributes {stable_mosaic.version = 11 : i64} {
  func.func @_block_kernel(%arg0: i32, %arg1: i32, %arg2: memref<1x16x64xf32, #tpu.memory_space<vmem>>, %arg3: memref<1x64xf32, #tpu.memory_space<vmem>>, %arg4: memref<1x64xf32, #tpu.memory_space<vmem>>, %arg5: memref<64x64xbf16, #tpu.memory_space<vmem>>, %arg6: memref<64x64xbf16, #tpu.memory_space<vmem>>, %arg7: memref<64x64xbf16, #tpu.memory_space<vmem>>, %arg8: memref<4x16x64xbf16, #tpu.memory_space<vmem>>, %arg9: memref<1x64xf32, #tpu.memory_space<vmem>>, %arg10: memref<1x64xf32, #tpu.memory_space<vmem>>, %arg11: memref<1x64xf32, #tpu.memory_space<vmem>>, %arg12: memref<64x256xbf16, #tpu.memory_space<vmem>>, %arg13: memref<1x256xf32, #tpu.memory_space<vmem>>, %arg14: memref<256x64xbf16, #tpu.memory_space<vmem>>, %arg15: memref<1x64xf32, #tpu.memory_space<vmem>>, %arg16: memref<1x16x64xf32, #tpu.memory_space<vmem>>, %arg17: memref<16x64xbf16, #tpu.memory_space<vmem>>, %arg18: memref<16x64xbf16, #tpu.memory_space<vmem>>) attributes {dimension_semantics = [#tpu.dimension_semantics<parallel>, #tpu.dimension_semantics<arbitrary>], iteration_bounds = array<i64: 2, 1>, scalar_prefetch = 0 : i64, scratch_operands = 2 : i64, tpu.core_type = #tpu.core_type<tc>, window_params = [{transform_indices = @transform_0, window_bounds = array<i64: 1, 16, 64>}, {pipeline_mode = #tpu.pipeline_mode<synchronous>, transform_indices = @transform_1, window_bounds = array<i64: 1, 64>}, {pipeline_mode = #tpu.pipeline_mode<synchronous>, transform_indices = @transform_2, window_bounds = array<i64: 1, 64>}, {pipeline_mode = #tpu.pipeline_mode<synchronous>, transform_indices = @transform_3, window_bounds = array<i64: 64, 64>}, {pipeline_mode = #tpu.pipeline_mode<synchronous>, transform_indices = @transform_4, window_bounds = array<i64: 64, 64>}, {pipeline_mode = #tpu.pipeline_mode<synchronous>, transform_indices = @transform_5, window_bounds = array<i64: 64, 64>}, {pipeline_mode = #tpu.pipeline_mode<synchronous>, transform_indices = @transform_6, window_bounds = array<i64: 4, 16, 64>}, {pipeline_mode = #tpu.pipeline_mode<synchronous>, transform_indices = @transform_7, window_bounds = array<i64: 1, 64>}, {pipeline_mode = #tpu.pipeline_mode<synchronous>, transform_indices = @transform_8, window_bounds = array<i64: 1, 64>}, {pipeline_mode = #tpu.pipeline_mode<synchronous>, transform_indices = @transform_9, window_bounds = array<i64: 1, 64>}, {pipeline_mode = #tpu.pipeline_mode<synchronous>, transform_indices = @transform_10, window_bounds = array<i64: 64, 256>}, {pipeline_mode = #tpu.pipeline_mode<synchronous>, transform_indices = @transform_11, window_bounds = array<i64: 1, 256>}, {pipeline_mode = #tpu.pipeline_mode<synchronous>, transform_indices = @transform_12, window_bounds = array<i64: 256, 64>}, {pipeline_mode = #tpu.pipeline_mode<synchronous>, transform_indices = @transform_13, window_bounds = array<i64: 1, 64>}, {transform_indices = @transform_14, window_bounds = array<i64: 1, 16, 64>}]} {
    %c0 = arith.constant 0 : index
    %c0_0 = arith.constant 0 : index
    %0 = vector.load %arg3[%c0, %c0_0] : memref<1x64xf32, #tpu.memory_space<vmem>>, vector<1x64xf32>
    %c0_1 = arith.constant 0 : index
    %c0_2 = arith.constant 0 : index
    %1 = vector.load %arg4[%c0_1, %c0_2] : memref<1x64xf32, #tpu.memory_space<vmem>>, vector<1x64xf32>
    %c0_i32 = arith.constant 0 : i32
    %2 = arith.cmpi eq, %arg1, %c0_i32 : i32
    %3 = arith.extui %2 : i1 to i32
    %c0_i32_3 = arith.constant 0 : i32
    %4 = arith.cmpi ne, %3, %c0_i32_3 : i32
    scf.if %4 {
      %c0_74 = arith.constant 0 : index
      %c0_75 = arith.constant 0 : index
      %c0_76 = arith.constant 0 : index
      %171 = vector.load %arg2[%c0_74, %c0_75, %c0_76] : memref<1x16x64xf32, #tpu.memory_space<vmem>>, vector<1x16x64xf32>
      %172 = vector.shape_cast %171 : vector<1x16x64xf32> to vector<16x64xf32>
      %cst_77 = arith.constant dense<0.000000e+00> : vector<16xf32>
      %173 = vector.multi_reduction <add>, %172, %cst_77 [1] : vector<16x64xf32> to vector<16xf32>
      %174 = vector.shape_cast %173 : vector<16xf32> to vector<16x1xf32>
      %cst_78 = arith.constant 6.400000e+01 : f32
      %175 = vector.broadcast %cst_78 : f32 to vector<16x1xf32>
      %176 = arith.divf %174, %175 : vector<16x1xf32>
      %177 = vector.broadcast %176 : vector<16x1xf32> to vector<16x64xf32>
      %178 = arith.subf %172, %177 : vector<16x64xf32>
      %179 = arith.mulf %178, %178 : vector<16x64xf32>
      %cst_79 = arith.constant dense<0.000000e+00> : vector<16xf32>
      %180 = vector.multi_reduction <add>, %179, %cst_79 [1] : vector<16x64xf32> to vector<16xf32>
      %181 = vector.shape_cast %180 : vector<16xf32> to vector<16x1xf32>
      %cst_80 = arith.constant 6.400000e+01 : f32
      %182 = vector.broadcast %cst_80 : f32 to vector<16x1xf32>
      %183 = arith.divf %181, %182 : vector<16x1xf32>
      %cst_81 = arith.constant 9.99999974E-6 : f32
      %184 = vector.broadcast %cst_81 : f32 to vector<16x1xf32>
      %185 = arith.addf %183, %184 : vector<16x1xf32>
      %186 = math.rsqrt %185 : vector<16x1xf32>
      %187 = vector.broadcast %186 : vector<16x1xf32> to vector<16x64xf32>
      %188 = arith.mulf %178, %187 : vector<16x64xf32>
      %189 = vector.broadcast %0 : vector<1x64xf32> to vector<16x64xf32>
      %190 = arith.mulf %188, %189 : vector<16x64xf32>
      %191 = vector.broadcast %1 : vector<1x64xf32> to vector<16x64xf32>
      %192 = arith.addf %190, %191 : vector<16x64xf32>
      %193 = arith.truncf %192 : vector<16x64xf32> to vector<16x64xbf16>
      %c0_82 = arith.constant 0 : index
      %c0_83 = arith.constant 0 : index
      %194 = vector.load %arg6[%c0_82, %c0_83] : memref<64x64xbf16, #tpu.memory_space<vmem>>, vector<64x64xbf16>
      %cst_84 = arith.constant dense<0.000000e+00> : vector<16x64xf32>
      %195 = tpu.matmul %193, %194, %cst_84 {dimension_numbers = #tpu.dot_dimension_numbers<[1], [0], [0], [1], [0, 0, 1, 1], [], []>} : vector<16x64xbf16>, vector<64x64xbf16>, vector<16x64xf32> -> vector<16x64xf32>
      %196 = arith.truncf %195 : vector<16x64xf32> to vector<16x64xbf16>
      %c0_85 = arith.constant 0 : index
      %c0_86 = arith.constant 0 : index
      %197 = vector.load %arg17[%c0_85, %c0_86] : memref<16x64xbf16, #tpu.memory_space<vmem>>, vector<16x64xbf16>
      tpu.vector_store %arg17[%c0_85, %c0_86], %196 {strides = array<i32>} : memref<16x64xbf16, #tpu.memory_space<vmem>>, vector<16x64xbf16>,
      %c0_87 = arith.constant 0 : index
      %c0_88 = arith.constant 0 : index
      %198 = vector.load %arg7[%c0_87, %c0_88] : memref<64x64xbf16, #tpu.memory_space<vmem>>, vector<64x64xbf16>
      %cst_89 = arith.constant dense<0.000000e+00> : vector<16x64xf32>
      %199 = tpu.matmul %193, %198, %cst_89 {dimension_numbers = #tpu.dot_dimension_numbers<[1], [0], [0], [1], [0, 0, 1, 1], [], []>} : vector<16x64xbf16>, vector<64x64xbf16>, vector<16x64xf32> -> vector<16x64xf32>
      %200 = arith.truncf %199 : vector<16x64xf32> to vector<16x64xbf16>
      %c0_90 = arith.constant 0 : index
      %c0_91 = arith.constant 0 : index
      %201 = vector.load %arg18[%c0_90, %c0_91] : memref<16x64xbf16, #tpu.memory_space<vmem>>, vector<16x64xbf16>
      tpu.vector_store %arg18[%c0_90, %c0_91], %200 {strides = array<i32>} : memref<16x64xbf16, #tpu.memory_space<vmem>>, vector<16x64xbf16>,
    } else {
    }
    %c16_i32 = arith.constant 16 : i32
    %5 = arith.muli %arg1, %c16_i32 : i32
    %6 = tpu.assume_multiple %5, 16 : i32
    %c0_4 = arith.constant 0 : index
    %7 = arith.index_cast %6 : i32 to index
    %c0_5 = arith.constant 0 : index
    %8 = vector.load %arg2[%c0_4, %7, %c0_5] : memref<1x16x64xf32, #tpu.memory_space<vmem>>, vector<1x16x64xf32>
    %9 = vector.shape_cast %8 : vector<1x16x64xf32> to vector<16x64xf32>
    %cst = arith.constant dense<0.000000e+00> : vector<16xf32>
    %10 = vector.multi_reduction <add>, %9, %cst [1] : vector<16x64xf32> to vector<16xf32>
    %11 = vector.shape_cast %10 : vector<16xf32> to vector<16x1xf32>
    %cst_6 = arith.constant 6.400000e+01 : f32
    %12 = vector.broadcast %cst_6 : f32 to vector<16x1xf32>
    %13 = arith.divf %11, %12 : vector<16x1xf32>
    %14 = vector.broadcast %13 : vector<16x1xf32> to vector<16x64xf32>
    %15 = arith.subf %9, %14 : vector<16x64xf32>
    %16 = arith.mulf %15, %15 : vector<16x64xf32>
    %cst_7 = arith.constant dense<0.000000e+00> : vector<16xf32>
    %17 = vector.multi_reduction <add>, %16, %cst_7 [1] : vector<16x64xf32> to vector<16xf32>
    %18 = vector.shape_cast %17 : vector<16xf32> to vector<16x1xf32>
    %cst_8 = arith.constant 6.400000e+01 : f32
    %19 = vector.broadcast %cst_8 : f32 to vector<16x1xf32>
    %20 = arith.divf %18, %19 : vector<16x1xf32>
    %cst_9 = arith.constant 9.99999974E-6 : f32
    %21 = vector.broadcast %cst_9 : f32 to vector<16x1xf32>
    %22 = arith.addf %20, %21 : vector<16x1xf32>
    %23 = math.rsqrt %22 : vector<16x1xf32>
    %24 = vector.broadcast %23 : vector<16x1xf32> to vector<16x64xf32>
    %25 = arith.mulf %15, %24 : vector<16x64xf32>
    %26 = vector.broadcast %0 : vector<1x64xf32> to vector<16x64xf32>
    %27 = arith.mulf %25, %26 : vector<16x64xf32>
    %28 = vector.broadcast %1 : vector<1x64xf32> to vector<16x64xf32>
    %29 = arith.addf %27, %28 : vector<16x64xf32>
    %30 = arith.truncf %29 : vector<16x64xf32> to vector<16x64xbf16>
    %c0_10 = arith.constant 0 : index
    %c0_11 = arith.constant 0 : index
    %31 = vector.load %arg5[%c0_10, %c0_11] : memref<64x64xbf16, #tpu.memory_space<vmem>>, vector<64x64xbf16>
    %cst_12 = arith.constant dense<0.000000e+00> : vector<16x64xf32>
    %32 = tpu.matmul %30, %31, %cst_12 {dimension_numbers = #tpu.dot_dimension_numbers<[1], [0], [0], [1], [0, 0, 1, 1], [], []>} : vector<16x64xbf16>, vector<64x64xbf16>, vector<16x64xf32> -> vector<16x64xf32>
    %33 = arith.truncf %32 : vector<16x64xf32> to vector<16x64xbf16>
    %c0_13 = arith.constant 0 : index
    %c0_14 = arith.constant 0 : index
    %34 = vector.load %arg17[%c0_13, %c0_14] : memref<16x64xbf16, #tpu.memory_space<vmem>>, vector<16x64xbf16>
    %c0_15 = arith.constant 0 : index
    %c0_16 = arith.constant 0 : index
    %35 = vector.load %arg18[%c0_15, %c0_16] : memref<16x64xbf16, #tpu.memory_space<vmem>>, vector<16x64xbf16>
    %cst_17 = arith.constant 0.000000e+00 : f32
    %36 = vector.broadcast %cst_17 : f32 to vector<16x64xf32>
    %37 = vector.extract_strided_slice %33 {offsets = [0, 0], sizes = [16, 16], strides = [1, 1]} : vector<16x64xbf16> to vector<16x16xbf16>
    %38 = vector.extract_strided_slice %34 {offsets = [0, 0], sizes = [16, 16], strides = [1, 1]} : vector<16x64xbf16> to vector<16x16xbf16>
    %39 = vector.extract_strided_slice %35 {offsets = [0, 0], sizes = [16, 16], strides = [1, 1]} : vector<16x64xbf16> to vector<16x16xbf16>
    %cst_18 = arith.constant dense<0.000000e+00> : vector<16x16xf32>
    %40 = tpu.matmul %37, %38, %cst_18 {dimension_numbers = #tpu.dot_dimension_numbers<[1], [1], [0], [0], [0, 0, 1, 0], [], []>} : vector<16x16xbf16>, vector<16x16xbf16>, vector<16x16xf32> -> vector<16x16xf32>
    %cst_19 = arith.constant dense<0xFF800000> : vector<16xf32>
    %41 = vector.multi_reduction <maximumf>, %40, %cst_19 [1] : vector<16x16xf32> to vector<16xf32>
    %42 = vector.shape_cast %41 : vector<16xf32> to vector<16x1xf32>
    %43 = vector.broadcast %42 : vector<16x1xf32> to vector<16x16xf32>
    %44 = arith.subf %40, %43 : vector<16x16xf32>
    %45 = math.exp %44 : vector<16x16xf32>
    %cst_20 = arith.constant dense<0.000000e+00> : vector<16xf32>
    %46 = vector.multi_reduction <add>, %45, %cst_20 [1] : vector<16x16xf32> to vector<16xf32>
    %47 = vector.shape_cast %46 : vector<16xf32> to vector<16x1xf32>
    %48 = arith.truncf %45 : vector<16x16xf32> to vector<16x16xbf16>
    %cst_21 = arith.constant dense<0.000000e+00> : vector<16x16xf32>
    %49 = tpu.matmul %48, %39, %cst_21 {dimension_numbers = #tpu.dot_dimension_numbers<[1], [0], [0], [1], [0, 0, 1, 1], [], []>} : vector<16x16xbf16>, vector<16x16xbf16>, vector<16x16xf32> -> vector<16x16xf32>
    %50 = tpu.reciprocal %47 {approx = true} : vector<16x1xf32> -> vector<16x1xf32>
    %51 = vector.broadcast %50 : vector<16x1xf32> to vector<16x16xf32>
    %52 = arith.mulf %49, %51 : vector<16x16xf32>
    %53 = arith.truncf %52 : vector<16x16xf32> to vector<16x16xbf16>
    %c0_22 = arith.constant 0 : index
    %c0_23 = arith.constant 0 : index
    %c0_24 = arith.constant 0 : index
    %54 = vector.load %arg8[%c0_22, %c0_23, %c0_24] : memref<4x16x64xbf16, #tpu.memory_space<vmem>>, vector<1x16x64xbf16>
    %55 = vector.shape_cast %54 : vector<1x16x64xbf16> to vector<16x64xbf16>
    %cst_25 = arith.constant dense<0.000000e+00> : vector<16x64xf32>
    %56 = tpu.matmul %53, %55, %cst_25 {dimension_numbers = #tpu.dot_dimension_numbers<[1], [0], [0], [1], [0, 0, 1, 1], [], []>} : vector<16x16xbf16>, vector<16x64xbf16>, vector<16x64xf32> -> vector<16x64xf32>
    %57 = arith.addf %36, %56 : vector<16x64xf32>
    %58 = vector.extract_strided_slice %33 {offsets = [0, 16], sizes = [16, 16], strides = [1, 1]} : vector<16x64xbf16> to vector<16x16xbf16>
    %59 = vector.extract_strided_slice %34 {offsets = [0, 16], sizes = [16, 16], strides = [1, 1]} : vector<16x64xbf16> to vector<16x16xbf16>
    %60 = vector.extract_strided_slice %35 {offsets = [0, 16], sizes = [16, 16], strides = [1, 1]} : vector<16x64xbf16> to vector<16x16xbf16>
    %cst_26 = arith.constant dense<0.000000e+00> : vector<16x16xf32>
    %61 = tpu.matmul %58, %59, %cst_26 {dimension_numbers = #tpu.dot_dimension_numbers<[1], [1], [0], [0], [0, 0, 1, 0], [], []>} : vector<16x16xbf16>, vector<16x16xbf16>, vector<16x16xf32> -> vector<16x16xf32>
    %cst_27 = arith.constant dense<0xFF800000> : vector<16xf32>
    %62 = vector.multi_reduction <maximumf>, %61, %cst_27 [1] : vector<16x16xf32> to vector<16xf32>
    %63 = vector.shape_cast %62 : vector<16xf32> to vector<16x1xf32>
    %64 = vector.broadcast %63 : vector<16x1xf32> to vector<16x16xf32>
    %65 = arith.subf %61, %64 : vector<16x16xf32>
    %66 = math.exp %65 : vector<16x16xf32>
    %cst_28 = arith.constant dense<0.000000e+00> : vector<16xf32>
    %67 = vector.multi_reduction <add>, %66, %cst_28 [1] : vector<16x16xf32> to vector<16xf32>
    %68 = vector.shape_cast %67 : vector<16xf32> to vector<16x1xf32>
    %69 = arith.truncf %66 : vector<16x16xf32> to vector<16x16xbf16>
    %cst_29 = arith.constant dense<0.000000e+00> : vector<16x16xf32>
    %70 = tpu.matmul %69, %60, %cst_29 {dimension_numbers = #tpu.dot_dimension_numbers<[1], [0], [0], [1], [0, 0, 1, 1], [], []>} : vector<16x16xbf16>, vector<16x16xbf16>, vector<16x16xf32> -> vector<16x16xf32>
    %71 = tpu.reciprocal %68 {approx = true} : vector<16x1xf32> -> vector<16x1xf32>
    %72 = vector.broadcast %71 : vector<16x1xf32> to vector<16x16xf32>
    %73 = arith.mulf %70, %72 : vector<16x16xf32>
    %74 = arith.truncf %73 : vector<16x16xf32> to vector<16x16xbf16>
    %c1 = arith.constant 1 : index
    %c0_30 = arith.constant 0 : index
    %c0_31 = arith.constant 0 : index
    %75 = vector.load %arg8[%c1, %c0_30, %c0_31] : memref<4x16x64xbf16, #tpu.memory_space<vmem>>, vector<1x16x64xbf16>
    %76 = vector.shape_cast %75 : vector<1x16x64xbf16> to vector<16x64xbf16>
    %cst_32 = arith.constant dense<0.000000e+00> : vector<16x64xf32>
    %77 = tpu.matmul %74, %76, %cst_32 {dimension_numbers = #tpu.dot_dimension_numbers<[1], [0], [0], [1], [0, 0, 1, 1], [], []>} : vector<16x16xbf16>, vector<16x64xbf16>, vector<16x64xf32> -> vector<16x64xf32>
    %78 = arith.addf %57, %77 : vector<16x64xf32>
    %79 = vector.extract_strided_slice %33 {offsets = [0, 32], sizes = [16, 16], strides = [1, 1]} : vector<16x64xbf16> to vector<16x16xbf16>
    %80 = vector.extract_strided_slice %34 {offsets = [0, 32], sizes = [16, 16], strides = [1, 1]} : vector<16x64xbf16> to vector<16x16xbf16>
    %81 = vector.extract_strided_slice %35 {offsets = [0, 32], sizes = [16, 16], strides = [1, 1]} : vector<16x64xbf16> to vector<16x16xbf16>
    %cst_33 = arith.constant dense<0.000000e+00> : vector<16x16xf32>
    %82 = tpu.matmul %79, %80, %cst_33 {dimension_numbers = #tpu.dot_dimension_numbers<[1], [1], [0], [0], [0, 0, 1, 0], [], []>} : vector<16x16xbf16>, vector<16x16xbf16>, vector<16x16xf32> -> vector<16x16xf32>
    %cst_34 = arith.constant dense<0xFF800000> : vector<16xf32>
    %83 = vector.multi_reduction <maximumf>, %82, %cst_34 [1] : vector<16x16xf32> to vector<16xf32>
    %84 = vector.shape_cast %83 : vector<16xf32> to vector<16x1xf32>
    %85 = vector.broadcast %84 : vector<16x1xf32> to vector<16x16xf32>
    %86 = arith.subf %82, %85 : vector<16x16xf32>
    %87 = math.exp %86 : vector<16x16xf32>
    %cst_35 = arith.constant dense<0.000000e+00> : vector<16xf32>
    %88 = vector.multi_reduction <add>, %87, %cst_35 [1] : vector<16x16xf32> to vector<16xf32>
    %89 = vector.shape_cast %88 : vector<16xf32> to vector<16x1xf32>
    %90 = arith.truncf %87 : vector<16x16xf32> to vector<16x16xbf16>
    %cst_36 = arith.constant dense<0.000000e+00> : vector<16x16xf32>
    %91 = tpu.matmul %90, %81, %cst_36 {dimension_numbers = #tpu.dot_dimension_numbers<[1], [0], [0], [1], [0, 0, 1, 1], [], []>} : vector<16x16xbf16>, vector<16x16xbf16>, vector<16x16xf32> -> vector<16x16xf32>
    %92 = tpu.reciprocal %89 {approx = true} : vector<16x1xf32> -> vector<16x1xf32>
    %93 = vector.broadcast %92 : vector<16x1xf32> to vector<16x16xf32>
    %94 = arith.mulf %91, %93 : vector<16x16xf32>
    %95 = arith.truncf %94 : vector<16x16xf32> to vector<16x16xbf16>
    %c2 = arith.constant 2 : index
    %c0_37 = arith.constant 0 : index
    %c0_38 = arith.constant 0 : index
    %96 = vector.load %arg8[%c2, %c0_37, %c0_38] : memref<4x16x64xbf16, #tpu.memory_space<vmem>>, vector<1x16x64xbf16>
    %97 = vector.shape_cast %96 : vector<1x16x64xbf16> to vector<16x64xbf16>
    %cst_39 = arith.constant dense<0.000000e+00> : vector<16x64xf32>
    %98 = tpu.matmul %95, %97, %cst_39 {dimension_numbers = #tpu.dot_dimension_numbers<[1], [0], [0], [1], [0, 0, 1, 1], [], []>} : vector<16x16xbf16>, vector<16x64xbf16>, vector<16x64xf32> -> vector<16x64xf32>
    %99 = arith.addf %78, %98 : vector<16x64xf32>
    %100 = vector.extract_strided_slice %33 {offsets = [0, 48], sizes = [16, 16], strides = [1, 1]} : vector<16x64xbf16> to vector<16x16xbf16>
    %101 = vector.extract_strided_slice %34 {offsets = [0, 48], sizes = [16, 16], strides = [1, 1]} : vector<16x64xbf16> to vector<16x16xbf16>
    %102 = vector.extract_strided_slice %35 {offsets = [0, 48], sizes = [16, 16], strides = [1, 1]} : vector<16x64xbf16> to vector<16x16xbf16>
    %cst_40 = arith.constant dense<0.000000e+00> : vector<16x16xf32>
    %103 = tpu.matmul %100, %101, %cst_40 {dimension_numbers = #tpu.dot_dimension_numbers<[1], [1], [0], [0], [0, 0, 1, 0], [], []>} : vector<16x16xbf16>, vector<16x16xbf16>, vector<16x16xf32> -> vector<16x16xf32>
    %cst_41 = arith.constant dense<0xFF800000> : vector<16xf32>
    %104 = vector.multi_reduction <maximumf>, %103, %cst_41 [1] : vector<16x16xf32> to vector<16xf32>
    %105 = vector.shape_cast %104 : vector<16xf32> to vector<16x1xf32>
    %106 = vector.broadcast %105 : vector<16x1xf32> to vector<16x16xf32>
    %107 = arith.subf %103, %106 : vector<16x16xf32>
    %108 = math.exp %107 : vector<16x16xf32>
    %cst_42 = arith.constant dense<0.000000e+00> : vector<16xf32>
    %109 = vector.multi_reduction <add>, %108, %cst_42 [1] : vector<16x16xf32> to vector<16xf32>
    %110 = vector.shape_cast %109 : vector<16xf32> to vector<16x1xf32>
    %111 = arith.truncf %108 : vector<16x16xf32> to vector<16x16xbf16>
    %cst_43 = arith.constant dense<0.000000e+00> : vector<16x16xf32>
    %112 = tpu.matmul %111, %102, %cst_43 {dimension_numbers = #tpu.dot_dimension_numbers<[1], [0], [0], [1], [0, 0, 1, 1], [], []>} : vector<16x16xbf16>, vector<16x16xbf16>, vector<16x16xf32> -> vector<16x16xf32>
    %113 = tpu.reciprocal %110 {approx = true} : vector<16x1xf32> -> vector<16x1xf32>
    %114 = vector.broadcast %113 : vector<16x1xf32> to vector<16x16xf32>
    %115 = arith.mulf %112, %114 : vector<16x16xf32>
    %116 = arith.truncf %115 : vector<16x16xf32> to vector<16x16xbf16>
    %c3 = arith.constant 3 : index
    %c0_44 = arith.constant 0 : index
    %c0_45 = arith.constant 0 : index
    %117 = vector.load %arg8[%c3, %c0_44, %c0_45] : memref<4x16x64xbf16, #tpu.memory_space<vmem>>, vector<1x16x64xbf16>
    %118 = vector.shape_cast %117 : vector<1x16x64xbf16> to vector<16x64xbf16>
    %cst_46 = arith.constant dense<0.000000e+00> : vector<16x64xf32>
    %119 = tpu.matmul %116, %118, %cst_46 {dimension_numbers = #tpu.dot_dimension_numbers<[1], [0], [0], [1], [0, 0, 1, 1], [], []>} : vector<16x16xbf16>, vector<16x64xbf16>, vector<16x64xf32> -> vector<16x64xf32>
    %120 = arith.addf %99, %119 : vector<16x64xf32>
    %121 = arith.addf %9, %120 : vector<16x64xf32>
    %c0_47 = arith.constant 0 : index
    %c0_48 = arith.constant 0 : index
    %122 = vector.load %arg9[%c0_47, %c0_48] : memref<1x64xf32, #tpu.memory_space<vmem>>, vector<1x64xf32>
    %123 = vector.broadcast %122 : vector<1x64xf32> to vector<16x64xf32>
    %124 = arith.addf %121, %123 : vector<16x64xf32>
    %c0_49 = arith.constant 0 : index
    %c0_50 = arith.constant 0 : index
    %125 = vector.load %arg10[%c0_49, %c0_50] : memref<1x64xf32, #tpu.memory_space<vmem>>, vector<1x64xf32>
    %c0_51 = arith.constant 0 : index
    %c0_52 = arith.constant 0 : index
    %126 = vector.load %arg11[%c0_51, %c0_52] : memref<1x64xf32, #tpu.memory_space<vmem>>, vector<1x64xf32>
    %cst_53 = arith.constant dense<0.000000e+00> : vector<16xf32>
    %127 = vector.multi_reduction <add>, %124, %cst_53 [1] : vector<16x64xf32> to vector<16xf32>
    %128 = vector.shape_cast %127 : vector<16xf32> to vector<16x1xf32>
    %cst_54 = arith.constant 6.400000e+01 : f32
    %129 = vector.broadcast %cst_54 : f32 to vector<16x1xf32>
    %130 = arith.divf %128, %129 : vector<16x1xf32>
    %131 = vector.broadcast %130 : vector<16x1xf32> to vector<16x64xf32>
    %132 = arith.subf %124, %131 : vector<16x64xf32>
    %133 = arith.mulf %132, %132 : vector<16x64xf32>
    %cst_55 = arith.constant dense<0.000000e+00> : vector<16xf32>
    %134 = vector.multi_reduction <add>, %133, %cst_55 [1] : vector<16x64xf32> to vector<16xf32>
    %135 = vector.shape_cast %134 : vector<16xf32> to vector<16x1xf32>
    %cst_56 = arith.constant 6.400000e+01 : f32
    %136 = vector.broadcast %cst_56 : f32 to vector<16x1xf32>
    %137 = arith.divf %135, %136 : vector<16x1xf32>
    %cst_57 = arith.constant 9.99999974E-6 : f32
    %138 = vector.broadcast %cst_57 : f32 to vector<16x1xf32>
    %139 = arith.addf %137, %138 : vector<16x1xf32>
    %140 = math.rsqrt %139 : vector<16x1xf32>
    %141 = vector.broadcast %140 : vector<16x1xf32> to vector<16x64xf32>
    %142 = arith.mulf %132, %141 : vector<16x64xf32>
    %143 = vector.broadcast %125 : vector<1x64xf32> to vector<16x64xf32>
    %144 = arith.mulf %142, %143 : vector<16x64xf32>
    %145 = vector.broadcast %126 : vector<1x64xf32> to vector<16x64xf32>
    %146 = arith.addf %144, %145 : vector<16x64xf32>
    %147 = arith.truncf %146 : vector<16x64xf32> to vector<16x64xbf16>
    %c0_58 = arith.constant 0 : index
    %c0_59 = arith.constant 0 : index
    %148 = vector.load %arg12[%c0_58, %c0_59] : memref<64x256xbf16, #tpu.memory_space<vmem>>, vector<64x256xbf16>
    %cst_60 = arith.constant dense<0.000000e+00> : vector<16x256xf32>
    %149 = tpu.matmul %147, %148, %cst_60 {dimension_numbers = #tpu.dot_dimension_numbers<[1], [0], [0], [1], [0, 0, 1, 1], [], []>} : vector<16x64xbf16>, vector<64x256xbf16>, vector<16x256xf32> -> vector<16x256xf32>
    %c0_61 = arith.constant 0 : index
    %c0_62 = arith.constant 0 : index
    %150 = vector.load %arg13[%c0_61, %c0_62] : memref<1x256xf32, #tpu.memory_space<vmem>>, vector<1x256xf32>
    %151 = vector.broadcast %150 : vector<1x256xf32> to vector<16x256xf32>
    %152 = arith.addf %149, %151 : vector<16x256xf32>
    %cst_63 = arith.constant 5.000000e-01 : f32
    %153 = vector.broadcast %cst_63 : f32 to vector<16x256xf32>
    %154 = arith.mulf %153, %152 : vector<16x256xf32>
    %cst_64 = arith.constant 0.707106769 : f32
    %155 = vector.broadcast %cst_64 : f32 to vector<16x256xf32>
    %156 = arith.mulf %152, %155 : vector<16x256xf32>
    %157 = math.erf %156 : vector<16x256xf32>
    %cst_65 = arith.constant 1.000000e+00 : f32
    %158 = vector.broadcast %cst_65 : f32 to vector<16x256xf32>
    %159 = arith.addf %158, %157 : vector<16x256xf32>
    %160 = arith.mulf %154, %159 : vector<16x256xf32>
    %161 = arith.truncf %160 : vector<16x256xf32> to vector<16x256xbf16>
    %c0_66 = arith.constant 0 : index
    %c0_67 = arith.constant 0 : index
    %162 = vector.load %arg14[%c0_66, %c0_67] : memref<256x64xbf16, #tpu.memory_space<vmem>>, vector<256x64xbf16>
    %cst_68 = arith.constant dense<0.000000e+00> : vector<16x64xf32>
    %163 = tpu.matmul %161, %162, %cst_68 {dimension_numbers = #tpu.dot_dimension_numbers<[1], [0], [0], [1], [0, 0, 1, 1], [], []>} : vector<16x256xbf16>, vector<256x64xbf16>, vector<16x64xf32> -> vector<16x64xf32>
    %c0_69 = arith.constant 0 : index
    %c0_70 = arith.constant 0 : index
    %164 = vector.load %arg15[%c0_69, %c0_70] : memref<1x64xf32, #tpu.memory_space<vmem>>, vector<1x64xf32>
    %165 = vector.broadcast %164 : vector<1x64xf32> to vector<16x64xf32>
    %166 = arith.addf %163, %165 : vector<16x64xf32>
    %167 = arith.addf %124, %166 : vector<16x64xf32>
    %c0_71 = arith.constant 0 : index
    %c0_72 = arith.constant 0 : index
    %c0_73 = arith.constant 0 : index
    %168 = vector.load %arg16[%c0_71, %c0_72, %c0_73] : memref<1x16x64xf32, #tpu.memory_space<vmem>>, vector<1x16x64xf32>
    %169 = vector.shape_cast %168 : vector<1x16x64xf32> to vector<16x64xf32>
    %170 = vector.shape_cast %167 : vector<16x64xf32> to vector<1x16x64xf32>
    tpu.vector_store %arg16[%c0_71, %c0_72, %c0_73], %170 {strides = array<i32>} : memref<1x16x64xf32, #tpu.memory_space<vmem>>, vector<1x16x64xf32>,
    return
  }
  func.func @transform_0(%arg0: i32, %arg1: i32) -> (i32, i32, i32) {
    %c0_i32 = arith.constant 0 : i32
    %c0_i32_0 = arith.constant 0 : i32
    %c0_i32_1 = arith.constant 0 : i32
    return %arg0, %c0_i32, %c0_i32_0 : i32, i32, i32
  }
  func.func @transform_1(%arg0: i32, %arg1: i32) -> (i32, i32) {
    %c0_i32 = arith.constant 0 : i32
    %c0_i32_0 = arith.constant 0 : i32
    %c0_i32_1 = arith.constant 0 : i32
    return %c0_i32, %c0_i32_0 : i32, i32
  }
  func.func @transform_2(%arg0: i32, %arg1: i32) -> (i32, i32) {
    %c0_i32 = arith.constant 0 : i32
    %c0_i32_0 = arith.constant 0 : i32
    %c0_i32_1 = arith.constant 0 : i32
    return %c0_i32, %c0_i32_0 : i32, i32
  }
  func.func @transform_3(%arg0: i32, %arg1: i32) -> (i32, i32) {
    %c0_i32 = arith.constant 0 : i32
    %c0_i32_0 = arith.constant 0 : i32
    %c0_i32_1 = arith.constant 0 : i32
    return %c0_i32, %c0_i32_0 : i32, i32
  }
  func.func @transform_4(%arg0: i32, %arg1: i32) -> (i32, i32) {
    %c0_i32 = arith.constant 0 : i32
    %c0_i32_0 = arith.constant 0 : i32
    %c0_i32_1 = arith.constant 0 : i32
    return %c0_i32, %c0_i32_0 : i32, i32
  }
  func.func @transform_5(%arg0: i32, %arg1: i32) -> (i32, i32) {
    %c0_i32 = arith.constant 0 : i32
    %c0_i32_0 = arith.constant 0 : i32
    %c0_i32_1 = arith.constant 0 : i32
    return %c0_i32, %c0_i32_0 : i32, i32
  }
  func.func @transform_6(%arg0: i32, %arg1: i32) -> (i32, i32, i32) {
    %c0_i32 = arith.constant 0 : i32
    %c0_i32_0 = arith.constant 0 : i32
    %c0_i32_1 = arith.constant 0 : i32
    %c0_i32_2 = arith.constant 0 : i32
    return %c0_i32, %c0_i32_0, %c0_i32_1 : i32, i32, i32
  }
  func.func @transform_7(%arg0: i32, %arg1: i32) -> (i32, i32) {
    %c0_i32 = arith.constant 0 : i32
    %c0_i32_0 = arith.constant 0 : i32
    %c0_i32_1 = arith.constant 0 : i32
    return %c0_i32, %c0_i32_0 : i32, i32
  }
  func.func @transform_8(%arg0: i32, %arg1: i32) -> (i32, i32) {
    %c0_i32 = arith.constant 0 : i32
    %c0_i32_0 = arith.constant 0 : i32
    %c0_i32_1 = arith.constant 0 : i32
    return %c0_i32, %c0_i32_0 : i32, i32
  }
  func.func @transform_9(%arg0: i32, %arg1: i32) -> (i32, i32) {
    %c0_i32 = arith.constant 0 : i32
    %c0_i32_0 = arith.constant 0 : i32
    %c0_i32_1 = arith.constant 0 : i32
    return %c0_i32, %c0_i32_0 : i32, i32
  }
  func.func @transform_10(%arg0: i32, %arg1: i32) -> (i32, i32) {
    %c0_i32 = arith.constant 0 : i32
    %c0_i32_0 = arith.constant 0 : i32
    %c0_i32_1 = arith.constant 0 : i32
    return %c0_i32, %c0_i32_0 : i32, i32
  }
  func.func @transform_11(%arg0: i32, %arg1: i32) -> (i32, i32) {
    %c0_i32 = arith.constant 0 : i32
    %c0_i32_0 = arith.constant 0 : i32
    %c0_i32_1 = arith.constant 0 : i32
    return %c0_i32, %c0_i32_0 : i32, i32
  }
  func.func @transform_12(%arg0: i32, %arg1: i32) -> (i32, i32) {
    %c0_i32 = arith.constant 0 : i32
    %c0_i32_0 = arith.constant 0 : i32
    %c0_i32_1 = arith.constant 0 : i32
    return %c0_i32, %c0_i32_0 : i32, i32
  }
  func.func @transform_13(%arg0: i32, %arg1: i32) -> (i32, i32) {
    %c0_i32 = arith.constant 0 : i32
    %c0_i32_0 = arith.constant 0 : i32
    %c0_i32_1 = arith.constant 0 : i32
    return %c0_i32, %c0_i32_0 : i32, i32
  }
  func.func @transform_14(%arg0: i32, %arg1: i32) -> (i32, i32, i32) {
    %c0_i32 = arith.constant 0 : i32
    %c0_i32_0 = arith.constant 0 : i32
    return %arg0, %arg1, %c0_i32 : i32, i32, i32
  }
}

</mosaic_0001>

<bundles_post_ra>
// kernel: tpu_custom_call.1
= control target key start
LH: loop header
LB: loop body
LE: loop exit
PB: predicated region body
PF: predicated region fallthrough
CT: control target
= control target key end

     0   :  { %6 = vsyncpa [#allocation3], 0  ;;  %s481_s0 = inlined_call_operand.hbm [shape: f32[8,128], index: 0, kind: input, shape index: {}]   ;;  %s482_s1 = inlined_call_operand.hbm [shape: f32[16,128], index: 1, kind: output, shape index: {}]  }
   0x1   :  { %7 = vsyncpa [#allocation4], 0 }
   0x2   :  { %9 = vsyncpa [#allocation4 + $0x1], 0  ;;  %s351_s6 = smov 0   ;;  %s353_s7 = smov 0  }
   0x3   :  { %s355_s8 = smov 0   ;;  %s357_s9 = smov 0  }
   0x4 LB: > { %s372_s10 = sadd.s32 4294967295, %s337_s9   ;;  %s183_s11 = sadd.s32 4294967294, %s337_s9   ;;  %s337_s9 = sphi %s357_s9, %s498_s9   ;;  %s333_s8 = sphi %s355_s8, %s497_s8   ;;  %s329_s7 = sphi %s353_s7, %s496_s7   ;;  %s325_s6 = sphi %s351_s6, %s495_s6  }
   0x5   : > { %s376_s12 = sadd.s32 1, %s337_s9   ;;  %s43_s13 = sadd.s32 1, %s333_s8 }
   0x6   : > { %s40_s14 = ssub.s32 %s337_s9, %s376_s12  ;;  %p53_p0 = scmp.ne.s32.totalorder %s333_s8, %s329_s7 }
   0x7   : > { %p41_p1 = scmp.eq.s32.totalorder %s40_s14, 0  ;;  %p54_p2 = scmp.eq.s32.totalorder %s372_s10, 1 }
   0x8   : > { %p59_p3 = scmp.ne.s32.totalorder %s329_s7, %s325_s6  ;;  %p60_p4 = scmp.eq.s32.totalorder %s183_s11, 1 }
   0x9   : > { %s387_s15 = scalar_select %p41_p1, %s333_s8, %s43_s13  }
   0xa   : > { %p389_p5 = por %p54_p2, %p53_p0  ;;  %p393_p6 = por %p60_p4, %p59_p3 }
   0xb   : > { %p184_p7 = scmp.ge.s32.totalorder %s337_s9, 1  ;;  %p67_p8 = scmp.lt.s32.totalorder %s337_s9, 3 }
   0xc   : > { %s486_s16 = scalar_select %p389_p5, 1, 0 }
   0xd   : > { %s487_s17 = scalar_select %p393_p6, 1, 0 }
   0xe   : > { %p483_p9 = scmp.eq.s32.totalorder %s372_s10, 0  ;;  %p400_p10 = pnand %p184_p7, %p67_p8 }
   0xf   : > { %s339_s19 = smov [#allocation2]   ;;  %s243_s24 = scalar_lea.hbm %s481_s0, 128 }
  0x10   : > { %s488_s18 = scalar_select %p400_p10, 1, 0 }
  0x11   : > { %s80_s20 = sshll.u32 %s339_s19, 4  ;;  %p199_p11 = pneg %p400_p10  ;;  %s81_s20 = int_to_ptr.vmem [resolvable:$true] %s80_s20 }
  0x12   : > { %p244_p13 = scmp.ne.s32.totalorder %s481_s0, %s243_s24  ;;  %p250_p3 = scmp.lt.u32.totalorder %s243_s24, %s481_s0 }
  0x13   : > { %p408_p12 = pnand %p483_p9, %p199_p11 }
  0x15   : > { %p245_p0 = pneg %p408_p12 }
  0x17   : > { %p246_p1 = pnand %p245_p0, %p244_p13 }
  0x19   : > { %p247_p2 = pneg %p246_p1 }
  0x1b   : > { %p252_p4 = pnand %p250_p3, %p247_p2 }
  0x1d   : > { %255 = shalt.err (!%p252_p4)
}
  0x1e   : > { %s256_s29 = scalar_lea.vmem %s81_s20, 128  ;;  %p264_p9 = scmp.lt.s32.totalorder %s81_s20, %s81_s20 }
  0x1f   : > { %p257_p7 = scmp.ne.s32.totalorder %s81_s20, %s256_s29  ;;  %p265_p6 = scmp.lt.s32.totalorder %s256_s29, %s256_s29 }
  0x21   : > { %p259_p8 = pnand %p257_p7, %p245_p0  ;;  %p266_p5 = por %p265_p6, %p264_p9 }
  0x23   : > { %p260_p11 = pneg %p259_p8 }
  0x25   : > { %p267_p10 = pnand %p266_p5, %p260_p11 }
  0x27   : > { %270 = shalt.err (!%p267_p10)
}
  0x28   : > { %202 = dma.hbm_to_vmem [thread:$0]  (!%p408_p12), %s481_s0, 128, %s81_s20, [#allocation3]  }
  0x29   : > { %p490_p13 = scmp.ne.s32.totalorder %s488_s18, 0 }
  0x2a   : > { %p491_p1 = scmp.eq.s32.totalorder (!%p490_p13), %s372_s10, 0 }
  0x2b   : > { %93 = sbr.rel (%p490_p13) target bundleno = 77 (0x4d), region = 24 }
  0x32   : > { %316 = dma.done.wait (%p491_p1), [#allocation3], 128   ;;  %p492_p0 = pmov %p491_p1 }
  0x33   : > { %s105_s3 = sand.u32 1, %s329_s7   ;;  %s190_s13 = sshll.u32 %s372_s10, 7  ;;  %v108_v0 = vld [vmem:[#allocation2] sm:$0xff] }
  0x34   : > { %318 = vsyncadd (%p492_p0), [#allocation3], 4294967168  ;;  %s188_s4 = sshll.u32 %s105_s3, 3  ;;  %s441_s18 = scalar_lea.hbm %s482_s1, %s190_s13 }
  0x35   : > { %s107_s5 = scalar_lea.vmem [#allocation5], %s188_s4  ;;  %s111_s20 = scalar_lea.sflag [#allocation4], %s105_s3 }
  0x36   : > { %s124_s11 = sshll.u32 %s107_s5, 4  ;;  %109 = vst [vmem:[%s107_s5] sm:$0xff] %v108_v0  ;;  %p493_p6 = scmp.ne.s32.totalorder %s486_s16, 0  ;;  %s436_s11 = int_to_ptr.vmem [resolvable:$true] %s124_s11 }
  0x37   : > { %s271_s21 = scalar_lea.vmem %s436_s11, 128  ;;  %s340_s22 = smov [#allocation5]  }
  0x38   : > { %p272_p5 = scmp.ne.s32.totalorder %s436_s11, %s271_s21  ;;  %s275_s10 = sshll.u32 %s340_s22, 4  ;;  %s276_s10 = int_to_ptr.vmem [resolvable:$false] %s275_s10 }
  0x39   : > { %s277_s23 = scalar_lea.vmem %s276_s10, 256  ;;  %p278_p12 = scmp.lt.s32.totalorder %s436_s11, %s276_s10 }
  0x3a   : > { %p273_p9 = pnand %p272_p5, %p493_p6  ;;  %p279_p2 = scmp.lt.s32.totalorder %s277_s23, %s271_s21 }
  0x3c   : > { %p274_p10 = pneg %p273_p9  ;;  %p280_p3 = por %p279_p2, %p278_p12 }
  0x3e   : > { %p281_p4 = pnand %p280_p3, %p274_p10 }
  0x40   : > { %284 = shalt.err (!%p281_p4)
}
  0x41   : > { %s285_s24 = scalar_lea.hbm %s441_s18, 128  ;;  %s289_s27 = scalar_lea.hbm %s482_s1, 256 }
  0x42   : > { %p286_p7 = scmp.ne.s32.totalorder %s441_s18, %s285_s24  ;;  %p290_p13 = scmp.lt.u32.totalorder %s441_s18, %s482_s1 }
  0x43   : > { %p291_p1 = scmp.lt.u32.totalorder %s289_s27, %s285_s24  ;;  %p293_p5 = scmp.lt.u32.totalorder %s285_s24, %s441_s18 }
  0x44   : > { %p287_p8 = pnand %p286_p7, %p493_p6 }
  0x45   : > { %p292_p0 = por %p291_p1, %p290_p13 }
  0x46   : > { %p288_p11 = pneg %p287_p8 }
  0x47   : > { %p294_p9 = por %p293_p5, %p292_p0 }
  0x49   : > { %p295_p10 = pnand %p294_p9, %p288_p11 }
  0x4b   : > { %298 = shalt.err (!%p295_p10)
}
  0x4c   : > { %197 = dma.vmem_to_hbm [thread:$0]  (%p493_p6), %s436_s11, 128, %s441_s18, %s111_s20  }
  0x4d PF: > { %p209_p12 = scmp.ge.s32.totalorder %s337_s9, 2  ;;  %s136_s30 = sand.u32 1, %s325_s6  }
  0x4e   : > { %p494_p2 = scmp.ne.s32.totalorder %s487_s17, 0  ;;  %s137_s2 = scalar_lea.sflag [#allocation4], %s136_s30 }
  0x50   : > { %p204_p3 = pnand %p209_p12, %p494_p2 }
  0x52   : > { %320 = dma.done.wait (!%p204_p3), %s137_s2, 128  }
  0x53   : > { %322 = vsyncadd (!%p204_p3), %s137_s2, 4294967168  ;;  %p12_p4 = scmp.ge.s32.totalorder %s376_s12, 4   ;;  %s495_s6 = smov %s329_s7 }
  0x54   : > { %s496_s7 = smov %s333_s8  ;;  %s497_s8 = smov %s387_s15 }
  0x55   : > { %s498_s9 = smov %s376_s12  ;;  %14 = sbr.rel (!%p12_p4) target bundleno = 4 (0x4), region = 61 }
  0x5c   :  { %142 = vsyncpa [#allocation3], 1 }
  0x5d   :  { %144 = vsyncpa [#allocation3 + $0x1], 1 }
  0x5e   :  { %145 = vsyncpa [#allocation4], 1 }
  0x5f   :  { %147 = vsyncpa [#allocation4 + $0x1], 1 }

// kernel: tpu_custom_call.1
= control target key start
LH: loop header
LB: loop body
LE: loop exit
PB: predicated region body
PF: predicated region fallthrough
CT: control target
= control target key end

     0   :  { %s3119_s0 = inlined_call_operand.hbm [shape: f32[2,16,64], index: 0, kind: input, shape index: {}, may-alias: {0,14}]   ;;  %s3120_s1 = inlined_call_operand.vmem [shape: f32[1,64], index: 1, kind: input, shape index: {}]   ;;  %s3121_s2 = inlined_call_operand.vmem [shape: f32[1,64], index: 2, kind: input, shape index: {}]   ;;  %s3122_s3 = inlined_call_operand.vmem [shape: bf16[64,64], index: 3, kind: input, shape index: {}]   ;;  %s3123_s4 = inlined_call_operand.vmem [shape: bf16[64,64], index: 4, kind: input, shape index: {}]   ;;  %s3124_s5 = inlined_call_operand.vmem [shape: bf16[64,64], index: 5, kind: input, shape index: {}]   ;;  %s3125_s6 = inlined_call_operand.vmem [shape: bf16[4,16,64], index: 6, kind: input, shape index: {}]   ;;  %s3126_s7 = inlined_call_operand.vmem [shape: f32[1,64], index: 7, kind: input, shape index: {}]   ;;  %s3127_s8 = inlined_call_operand.vmem [shape: f32[1,64], index: 8, kind: input, shape index: {}]   ;;  %s3128_s9 = inlined_call_operand.vmem [shape: f32[1,64], index: 9, kind: input, shape index: {}]   ;;  %s3129_s10 = inlined_call_operand.vmem [shape: bf16[64,256], index: 10, kind: input, shape index: {}]   ;;  %s3130_s11 = inlined_call_operand.vmem [shape: f32[1,256], index: 11, kind: input, shape index: {}]   ;;  %s3131_s12 = inlined_call_operand.vmem [shape: bf16[256,64], index: 12, kind: input, shape index: {}]   ;;  %s3132_s13 = inlined_call_operand.vmem [shape: f32[1,64], index: 13, kind: input, shape index: {}]   ;;  %s3133_s14 = inlined_call_operand.hbm [shape: f32[2,16,64], index: 14, kind: output, shape index: {}, may-alias: {0,14}]  }
   0x1   :  { %3139 = sst [smem:[#allocation14_spill]] %s3132_s13 }
   0x2   :  { %3140 = sst [smem:[#allocation15_spill]] %s3133_s14 }
   0x3   :  { %19 = vsyncpa [#allocation5], 0 }
   0x4   :  { %21 = vsyncpa [#allocation5 + $0x1], 0 }
   0x5   :  { %22 = vsyncpa [#allocation6], 0 }
   0x6   :  { %24 = vsyncpa [#allocation6 + $0x1], 0  ;;  %s2625_s29 = smov 0   ;;  %s2627_s30 = smov 0  }
   0x7   :  { %s2629_s15 = smov 0   ;;  %s2631_s16 = smov 0  }
   0x8   :  { %s2633_s17 = smov 0   ;;  %s2635_s18 = smov 0  }
   0x9 LB: > { %3141 = sst [smem:[#allocation10_spill]] %s2516_s29  ;;  %s2002_s19 = sadd.s32 4294967295, %s2536_s18   ;;  %s2536_s18 = sphi %s2635_s18, %s30_s18   ;;  %s2532_s17 = sphi %s2633_s17, %s3159_s17   ;;  %s2528_s16 = sphi %s2631_s16, %s3158_s16   ;;  %s2524_s15 = sphi %s2629_s15, %s3162_s15   ;;  %s2520_s30 = sphi %s2627_s30, %s3161_s30   ;;  %s2516_s29 = sphi %s2625_s29, %s3160_s29  }
   0xa   : > { %3142 = sst [smem:[#allocation11_spill]] %s2532_s17  ;;  %s2003_s20 = sadd.s32 4294967294, %s2536_s18  }
   0xb   : > { %s42_s21 = sadd.s32 1, %s2532_s17  ;;  %s49_s22 = sadd.s32 1, %s2524_s15 }
   0xc   : > { %p44_p0 = scmp.ge.s32.totalorder %s42_s21, 2  ;;  %p56_p1 = scmp.ne.s32.totalorder %s2524_s15, %s2520_s30 }
   0xd   : > { %p57_p2 = scmp.eq.s32.totalorder %s2536_s18, 0  ;;  %p62_p3 = scmp.ne.s32.totalorder %s2520_s30, %s2516_s29 }
   0xe   : > { %s3164_s21 = smov (%p44_p0, %s42_s21), 0  ;;  %p63_p5 = scmp.eq.s32.totalorder %s2002_s19, 0 }
   0xf   : > { %3143 = sst [smem:[#allocation12_spill]] %s3164_s21  ;;  %p2666_p4 = por %p57_p2, %p56_p1 }
  0x10   : > { %s46_s24 = ssub.s32 %s2532_s17, %s3164_s21  ;;  %p361_p6 = scmp.eq.s32.totalorder %s2002_s19, 1 }
  0x11   : > { %p47_p7 = scmp.eq.s32.totalorder %s46_s24, 0  ;;  %p2672_p8 = por %p63_p5, %p62_p3 }
  0x12   : > { %p2676_p9 = por %p361_p6, %p56_p1  ;;  %p367_p10 = scmp.eq.s32.totalorder %s2003_s20, 1 }
  0x13   : > { %s2681_s27 = scalar_select %p47_p7, %s2524_s15, %s49_s22  }
  0x14   : > { %s3146_s26 = scalar_select %p2676_p9, 1, 0 }
  0x15   : > { %3147 = sst [smem:[#allocation13_spill]] %s2681_s27  ;;  %p2683_p11 = por %p367_p10, %p62_p3 }
  0x16   : > { %p2268_p13 = scmp.lt.s32.totalorder %s2536_s18, 2  ;;  %s426_s19 = sand.u32 1, %s2524_s15  }
  0x17   : > { %s3148_s28 = scalar_select %p2683_p11, 1, 0 }
  0x18   : > { %s2006_s24 = sshll.u32 %s426_s19, 4  ;;  %s2083_s21 = sshll.u32 %s2532_s17, 8 }
  0x19   : > { %s2694_s13 = scalar_lea.hbm %s3119_s0, %s2083_s21  ;;  %s430_s20 = scalar_lea.vmem [#allocation4], %s2006_s24 }
  0x1a   : > { %s437_s22 = sshll.u32 %s430_s20, 4  ;;  %p2700_p0 = pnand %p2268_p13, %p2666_p4  ;;  %s2696_s22 = int_to_ptr.vmem [resolvable:$true] %s437_s22 }
  0x1b   : > { %s2705_s17 = scalar_lea.sflag [#allocation5], %s426_s19  ;;  %s2424_s14 = scalar_lea.hbm %s2694_s13, 256 }
  0x1c   : > { %p2425_p2 = scmp.ne.s32.totalorder %s2694_s13, %s2424_s14  ;;  %p2426_p3 = pneg %p2700_p0 }
  0x1d   : > { %s2429_s23 = scalar_lea.hbm %s3119_s0, 512  ;;  %p2430_p4 = scmp.lt.u32.totalorder %s2694_s13, %s3119_s0 }
  0x1e   : > { %p2427_p5 = pnand %p2426_p3, %p2425_p2  ;;  %p2431_p7 = scmp.lt.u32.totalorder %s2429_s23, %s2424_s14 }
  0x1f   : > { %p2433_p13 = scmp.lt.u32.totalorder %s2424_s14, %s2694_s13 }
  0x20   : > { %p2428_p6 = pneg %p2427_p5  ;;  %p2432_p10 = por %p2431_p7, %p2430_p4 }
  0x22   : > { %p2434_p12 = por %p2433_p13, %p2432_p10 }
  0x24   : > { %p2435_p1 = pnand %p2434_p12, %p2428_p6 }
  0x26   : > { %2438 = shalt.err (!%p2435_p1)
}
  0x27   : > { %s2439_s19 = scalar_lea.vmem %s2696_s22, 256  ;;  %s2538_s29 = smov [#allocation4]  }
  0x28   : > { %p2440_p2 = scmp.ne.s32.totalorder %s2696_s22, %s2439_s19  ;;  %s2444_s21 = sshll.u32 %s2538_s29, 4  ;;  %s2445_s21 = int_to_ptr.vmem [resolvable:$false] %s2444_s21 }
  0x29   : > { %s2446_s24 = scalar_lea.vmem %s2445_s21, 512  ;;  %p2447_p9 = scmp.lt.s32.totalorder %s2696_s22, %s2445_s21 }
  0x2a   : > { %p2442_p5 = pnand %p2440_p2, %p2426_p3  ;;  %p2448_p4 = scmp.lt.s32.totalorder %s2446_s24, %s2439_s19 }
  0x2c   : > { %p2443_p11 = pneg %p2442_p5  ;;  %p2449_p7 = por %p2448_p4, %p2447_p9 }
  0x2e   : > { %p2450_p10 = pnand %p2449_p7, %p2443_p11 }
  0x30   : > { %2453 = shalt.err (!%p2450_p10)
}
  0x31   : > { %s2539_s14 = smov 128   ;;  %s2540_s23 = smov 8  }
  0x32   : > { %2263 = dma.hbm_to_vmem [thread:$0]  (!%p2700_p0), %s2694_s13, 256, %s2696_s22, %s2705_s17, %s2539_s14, %s2539_s14, %s2540_s23  }
  0x33   : > { %p445_p12 = scmp.lt.s32.totalorder %s2536_s18, 3  ;;  %p3150_p1 = scmp.ge.s32.totalorder %s2536_s18, 1 }
  0x35   : > { %p446_p3 = pnand %p3150_p1, %p445_p12 }
  0x36   : > { %s2737_s20 = sand.u32 (!%p446_p3), 1, %s2520_s30  }
  0x37   : > { %449 = sbr.rel (%p446_p3) target bundleno = 3316 (0xcf4), region = 76  ;;  %s2010_s19 = sshll.u32 (!%p446_p3), %s2737_s20, 4 }
  0x38   : > { %s452_s29 = scalar_lea.sflag (!%p446_p3), [#allocation5], %s2737_s20  ;;  %s455_s21 = scalar_lea.vmem (!%p446_p3), [#allocation4], %s2010_s19 }
  0x3e   : > { %2507 = dma.done.wait (%p2672_p8), %s452_s29, 256  }
  0x3f   : > { %2509 = vsyncadd (%p2672_p8), %s452_s29, 4294967040  ;;  %vm510_vm0 = vcmask 523264   ;;  %v2747_v0 = vld [vmem:[%s455_s21] sm:$0xff]  ;;  %v2749_v1 = vld [vmem:[%s455_s21 + $0x8] sm:$0xff]  ;;  %v2541_v25 = vmov 0.0   ;;  %vm2542_vm1 = vmmov 0  }
  0x40   : > { %v511_v2 = vsel %vm510_vm0, %v2747_v0, 0.0  ;;  %v514_v3 = vsel %vm510_vm0, %v2749_v1, 0.0  ;;  %v2328_v24 = vld [vmem:[%s3123_s4] sm:$0xff]   ;;  %2148 = vmatprep.subr.bf16.mxu0 %v2541_v25  ;;  %2160 = vmatprep.subr.bf16.mxu1 %v2541_v25  ;;  %v2330_v27 = vld [vmem:[%s3123_s4 + $0x8] sm:$0xff]   ;;  %v2332_v29 = vld [vmem:[%s3123_s4 + $0x10] sm:$0xff]   ;;  %vm836_vm2 = vcmask 130048  }
  0x41   : > { %512 = vadd.xlane.f32.xlu0 %v511_v2  ;;  %714 = vadd.xlane.f32.xlu1 %v511_v2  ;;  %v2329_v26 = vld [vmem:[%s3124_s5] sm:$0xff]   ;;  %v2331_v28 = vld [vmem:[%s3124_s5 + $0x8] sm:$0xff]   ;;  %v2333_v30 = vld [vmem:[%s3124_s5 + $0x10] sm:$0xff]   ;;  %s2543_s29 = smov 112   ;;  %s2544_s21 = smov 96  }
  0x42   : > { %2149 = vmatpush3.bf16.msra.mxu0 %v2328_v24  ;;  %2161 = vmatpush3.bf16.msra.mxu1 %v2329_v26  ;;  %v2334_v31 = vld [vmem:[%s3123_s4 + $0x18] sm:$0xff]   ;;  %v2085_v47 = vld [vmem:[%s3120_s1] ss:$0 sm:$0xff]  ;;  %v2337_v59 = vld [vmem:[%s3122_s3 + $0x8] sm:$0xff]   ;;  %s2545_s13 = smov 80   ;;  %s3151_s23 = sld [smem:[#allocation14_spill]] }
  0x43   : > { %2150 = vmatprep.subr.bf16.mxu0 %v2541_v25  ;;  %2162 = vmatprep.subr.bf16.mxu1 %v2541_v25  ;;  %v2335_v32 = vld [vmem:[%s3124_s5 + $0x18] sm:$0xff]   ;;  %v2086_v51 = vld [vmem:[%s3121_s2] ss:$0 sm:$0xff]  ;;  %v2338_v62 = vld [vmem:[%s3122_s3 + $0x10] sm:$0xff]   ;;  %s3152_s27 = sld [smem:[#allocation15_spill]]  ;;  %p3153_p9 = scmp.ne.s32.totalorder %s3146_s26, 0 }
  0x44   : > { %2156 = vmatprep.mubr.msk.bf16.mxu0 %vm2542_vm1, %v2541_v25  ;;  %2168 = vmatprep.mubr.msk.bf16.mxu1 %vm2542_vm1, %v2541_v25  ;;  %v2336_v55 = vld [vmem:[%s3122_s3] sm:$0xff]   ;;  %s2547_s24 = smov [#allocation7]  }
  0x45   : > { %515 = vadd.xlane.f32.xlu0 %v514_v3  ;;  %717 = vadd.xlane.f32.xlu1 %v514_v3  ;;  %v2339_v3 = vld [vmem:[%s3122_s3 + $0x18] sm:$0xff]   ;;  %s2458_s14 = sshll.u32 %s2547_s24, 4  ;;  %s2459_s14 = int_to_ptr.vmem [resolvable:$false] %s2458_s14 }
  0x46   : > { %2151 = vmatpush3.bf16.msra.mxu0 %v2330_v27  ;;  %2163 = vmatpush3.bf16.msra.mxu1 %v2331_v28 }
  0x47   : > { %2152 = vmatprep.subr.bf16.mxu0 %v2541_v25  ;;  %2164 = vmatprep.subr.bf16.mxu1 %v2541_v25 }
  0x4a   : > { %2153 = vmatpush3.bf16.msra.mxu0 %v2332_v29  ;;  %2165 = vmatpush3.bf16.msra.mxu1 %v2333_v30 }
  0x4b   : > { %2154 = vmatprep.subr.bf16.mxu0 %v2541_v25  ;;  %2166 = vmatprep.subr.bf16.mxu1 %v2541_v25 }
  0x4e   : > { %2155 = vmatpush3.bf16.msra.mxu0 %v2334_v31  ;;  %2167 = vmatpush3.bf16.msra.mxu1 %v2335_v32 }
  0x4f   : > { %2172 = vmatprep.subr.bf16.mxu0 %v2541_v25  ;;  %2190 = vmatprep.subr.bf16.mxu1 %v2541_v25 }
  0xce   : > { %v513_v4 = vpop.xlane.xlu0 %512  ;;  %v715_v5 = vpop.xlane.xlu1 %714 }
  0xcf   : > { %v518_v6 = vmul.f32 0.015625, %v513_v4  ;;  %v720_v7 = vmul.f32 0.015625, %v715_v5 }
  0xd1   : > { %v2756_v8 = vsub.f32 %v2747_v0, %v518_v6  ;;  %v2759_v9 = vsub.f32 %v2747_v0, %v720_v7 }
  0xd2   : > { %v516_v10 = vpop.xlane.xlu0 %515  ;;  %v718_v11 = vpop.xlane.xlu1 %717 }
  0xd3   : > { %v519_v12 = vmul.f32 0.015625, %v516_v10  ;;  %v721_v13 = vmul.f32 0.015625, %v718_v11  ;;  %v522_v14 = vmul.f32 %v2756_v8, %v2756_v8  ;;  %v724_v15 = vmul.f32 %v2759_v9, %v2759_v9 }
  0xd5   : > { %v521_v16 = vsub.f32 %v2749_v1, %v519_v12  ;;  %v2767_v17 = vsub.f32 %v2749_v1, %v721_v13  ;;  %v524_v18 = vsel %vm510_vm0, %v522_v14, 0.0  ;;  %v726_v19 = vsel %vm510_vm0, %v724_v15, 0.0 }
  0xd6   : > { %525 = vadd.xlane.f32.xlu0 %v524_v18 }
  0xd7   : > { %v523_v20 = vmul.f32 %v521_v16, %v521_v16  ;;  %v725_v21 = vmul.f32 %v2767_v17, %v2767_v17 }
  0xd9   : > { %v527_v22 = vsel %vm510_vm0, %v523_v20, 0.0  ;;  %v729_v23 = vsel %vm510_vm0, %v725_v21, 0.0 }
  0xda   : > { %727 = vadd.xlane.f32.xlu0 %v726_v19  ;;  %528 = vadd.xlane.f32.xlu1 %v527_v22 }
  0xde   : > { %730 = vadd.xlane.f32.xlu1 %v729_v23 }
 0x163   : > { %v526_v33 = vpop.xlane.xlu0 %525 }
 0x164   : > { %v530_v34 = vmul.f32 0.015625, %v526_v33 }
 0x166   : > { %v532_v35 = vadd.f32 1e-05, %v530_v34 }
 0x167   : > { %v529_v36 = vpop.xlane.xlu1 %528  ;;  %v728_v39 = vpop.xlane.xlu0 %727 }
 0x168   : > { %2372 = vrsqrt.f32 %v532_v35  ;;  %v531_v37 = vmul.f32 0.015625, %v529_v36  ;;  %v732_v42 = vmul.f32 0.015625, %v728_v39 }
 0x16a   : > { %v533_v38 = vadd.f32 1e-05, %v531_v37  ;;  %v734_v45 = vadd.f32 1e-05, %v732_v42 }
 0x16b   : > { %v731_v40 = vpop.xlane.xlu1 %730 }
 0x16c   : > { %2374 = vrsqrt.f32 %v533_v38  ;;  %v733_v41 = vmul.f32 0.015625, %v731_v40 }
 0x16e   : > { %v735_v43 = vadd.f32 1e-05, %v733_v41 }
 0x170   : > { %2376 = vrsqrt.f32 %v735_v43 }
 0x171   : > { %2378 = vrsqrt.f32 %v734_v45 }
 0x172   : > { %v2373_v44 = vpop.eup %2372 }
 0x173   : > { %v536_v46 = vmul.f32 %v2373_v44, %v2756_v8 }
 0x175   : > { %v544_v50 = vmul.f32 %v2085_v47, %v536_v46 }
 0x176   : > { %v2375_v48 = vpop.eup %2374 }
 0x177   : > { %v537_v49 = vmul.f32 %v2375_v48, %v521_v16  ;;  %v552_v53 = vadd.f32 %v2086_v51, %v544_v50 }
 0x179   : > { %v545_v52 = vmul.f32 %v2085_v47, %v537_v49 }
 0x17a   : > { %v2377_v57 = vpop.eup %2376 }
 0x17b   : > { %v553_v54 = vadd.f32 %v2086_v51, %v545_v52  ;;  %v2379_v58 = vpop.eup %2378  ;;  %v739_v60 = vmul.f32 %v2377_v57, %v2767_v17 }
 0x17c   : > { %v738_v61 = vmul.f32 %v2379_v58, %v2759_v9 }
 0x17d   : > { %v554_v56 = vpack.c.bf16 %v553_v54, %v552_v53  ;;  %v747_v63 = vmul.f32 %v2085_v47, %v739_v60 }
 0x17e   : > { %v746_v2 = vmul.f32 %v2085_v47, %v738_v61 }
 0x17f   : > { %2157 = vmatmul.mubr.msk.bf16.vlgmr.msra.gmra.mrb[0].mxu0 %vm510_vm0, %v554_v56  ;;  %2169 = vmatmul.mubr.msk.bf16.vlgmr.msra.gmra.mrb[0].mxu1 %vm510_vm0, %v554_v56  ;;  %v755_v4 = vadd.f32 %v2086_v51, %v747_v63 }
 0x180   : > { %2173 = vmatpush3.bf16.msra.mxu0 %v2336_v55  ;;  %2180 = vmatprep.mubr.msk.bf16.mxu0 %vm2542_vm1, %v2541_v25  ;;  %v754_v5 = vadd.f32 %v2086_v51, %v746_v2  ;;  %v2340_v2 = vld [vmem:[%s3125_s6] sm:$0xff]  }
 0x181   : > { %2174 = vmatprep.subr.bf16.mxu0 %v2541_v25  ;;  %2192 = vmatprep.mubr.msk.bf16.mxu1 %vm2542_vm1, %v2541_v25 }
 0x182   : > { %v756_v6 = vpack.c.bf16 %v755_v4, %v754_v5 }
 0x184   : > { %2175 = vmatpush3.bf16.msra.mxu0 %v2337_v59 }
 0x185   : > { %2176 = vmatprep.subr.bf16.mxu0 %v2541_v25 }
 0x188   : > { %2177 = vmatpush3.bf16.msra.mxu0 %v2338_v62 }
 0x189   : > { %2178 = vmatprep.subr.bf16.mxu0 %v2541_v25 }
 0x18c   : > { %2179 = vmatpush3.bf16.msra.mxu0 %v2339_v3  ;;  %v2341_v3 = vld [vmem:[%s3125_s6 + $0x8] sm:$0xff]  }
 0x18d   : > { %2184 = vmatprep.subr.bf16.mxu0 %v2541_v25 }
 0x18f   : > { %2181 = vmatmul.mubr.msk.bf16.vlgmr.msra.gmra.mrb[4].mxu0 %vm510_vm0, %v756_v6 }
 0x190   : > { %2186 = vmatprep.mubr.msk.bf16.mxu0 %vm2542_vm1, %v2541_v25 }
 0x252   : > { %v624_v7 = vpop.f32.mrb[0].mxu0  ;;  %v699_v8 = vpop.f32.mrb[0].mxu1 }
 0x253   : > { %v2158_v9 = vpop.f32.mrb[1].mxu0  ;;  %v2170_v10 = vpop.f32.mrb[1].mxu1 }
 0x254   : > { %v627_v11 = vpop.f32.mrb[2].mxu0  ;;  %v702_v12 = vpop.f32.mrb[2].mxu1 }
 0x255   : > { %v631_v13 = vpack.c.bf16 %v627_v11, %v624_v7  ;;  %v706_v14 = vpack.c.bf16 %v702_v12, %v699_v8  ;;  %v2159_v15 = vpop.f32.mrb[3].mxu0  ;;  %v2171_v16 = vpop.f32.mrb[3].mxu1 }
 0x257   : > { %632 = vst.msk [vmem:[#allocation2] sm:$0xff] %vm510_vm0, %v631_v13  ;;  %707 = vst.msk [vmem:[#allocation3] sm:$0xff] %vm510_vm0, %v706_v14 }
 0x25e   : > { %v2849_v17 = vld [vmem:[#allocation3] sm:$0xff]  ;;  %v2851_v18 = vld [vmem:[#allocation2] sm:$0xff] }
 0x25f   : > { %2191 = vmatpush3.bf16.msra.mxu1 %v2849_v17  ;;  %958 = vrot.lane.b32.xlu0 %v2851_v18, %s2543_s29  ;;  %v841_v19 = vsel %vm836_vm2, %v2851_v18, 0 }
 0x260   : > { %2185 = vmatpush3.bf16.xpose.msra.mxu0 %v841_v19  ;;  %2202 = vmatprep.subr.bf16.mxu1 %v2541_v25 }
 0x261   : > { %2196 = vmatprep.subr.bf16.mxu0 %v2541_v25 }
 0x262   : > { %v826_v20 = vpop.f32.mrb[4].mxu0 }
 0x263   : > { %v2182_v21 = vpop.f32.mrb[5].mxu0 }
 0x264   : > { %v829_v22 = vpop.f32.mrb[6].mxu0 }
 0x265   : > { %v2860_v23 = vpack.c.bf16 %v829_v22, %v826_v20  ;;  %v2183_v24 = vpop.f32.mrb[7].mxu0 }
 0x267   : > { %955 = vrot.lane.b32.xlu1 %v2860_v23, %s2543_s29  ;;  %2187 = vmatmul.mubr.msk.bf16.vlgmr.msra.gmra.mrb[8].mxu0 %vm836_vm2, %v2860_v23 }
 0x268   : > { %2198 = vmatprep.mubr.msk.bf16.mxu0 %vm2542_vm1, %v2541_v25 }
 0x2d1   : > { %v959_v26 = vpop.permute.xlu0 %958 }
 0x2d2   : > { %v964_v27 = vsel %vm836_vm2, %v959_v26, 0 }
 0x2d3   : > { %2197 = vmatpush3.bf16.xpose.msra.mxu0 %v964_v27 }
 0x2d4   : > { %2208 = vmatprep.subr.bf16.mxu0 %v2541_v25 }
 0x2d9   : > { %v956_v28 = vpop.permute.xlu1 %955 }
 0x2da   : > { %2199 = vmatmul.mubr.msk.bf16.vlgmr.msra.gmra.mrb[12].mxu0 %vm836_vm2, %v956_v28 }
 0x2db   : > { %2210 = vmatprep.mubr.msk.bf16.mxu0 %vm2542_vm1, %v2541_v25  ;;  %2209 = vmatpush3.bf16.msra.mxu0 %v2341_v3 }
 0x2dc   : > { %2220 = vmatprep.subr.bf16.mxu0 %v2541_v25 }
 0x33a   : > { %v877_v29 = vpop.f32.mrb[8].mxu0 }
 0x33b   : > { %v2188_v30 = vpop.f32.mrb[9].mxu0  ;;  %v884_v31 = vsel %vm836_vm2, %v877_v29, -inf }
 0x33c   : > { %885 = vmax.xlane.f32.xlu1 %v884_v31  ;;  %v880_v32 = vpop.f32.mrb[10].mxu0 }
 0x33d   : > { %v2189_v33 = vpop.f32.mrb[11].mxu0  ;;  %v887_v34 = vsel %vm836_vm2, %v880_v32, -inf }
 0x33e   : > { %888 = vmax.xlane.f32.xlu0 %v887_v34 }
 0x3ad   : > { %v1000_v35 = vpop.f32.mrb[12].mxu0 }
 0x3ae   : > { %v2200_v36 = vpop.f32.mrb[13].mxu0  ;;  %v1007_v37 = vsel %vm836_vm2, %v1000_v35, -inf }
 0x3af   : > { %1008 = vmax.xlane.f32.xlu0 %v1007_v37  ;;  %v1003_v38 = vpop.f32.mrb[14].mxu0 }
 0x3b0   : > { %v2201_v39 = vpop.f32.mrb[15].mxu0  ;;  %v1010_v40 = vsel %vm836_vm2, %v1003_v38, -inf }
 0x3b1   : > { %1011 = vmax.xlane.f32.xlu1 %v1010_v40 }
 0x3c5   : > { %1027 = vrot.lane.b32.xlu0 %v2849_v17, %s2543_s29  ;;  %s2084_s29 = sshll.u32 %s2528_s16, 8  ;;  %s1901_s16 = scalar_lea.sflag [#allocation6], %s2737_s20 }
 0x3c6   : > { %s3065_s22 = scalar_lea.hbm %s3152_s27, %s2084_s29 }
 0x3c9   : > { %v886_v41 = vpop.xlane.xlu1 %885  ;;  %1182 = vrot.lane.b32.xlu0 %v2860_v23, %s2544_s21 }
 0x3ca   : > { %v890_v42 = vsub.f32 %v877_v29, %v886_v41 }
 0x3cb   : > { %v889_v43 = vpop.xlane.xlu0 %888 }
 0x3cc   : > { %v892_v44 = vmul.f32 1.442695, %v890_v42  ;;  %v891_v45 = vsub.f32 %v880_v32, %v889_v43 }
 0x3ce   : > { %v894_v46 = vmul.f32 1.442695, %v891_v45  ;;  %2380 = vpow2.f32 %v892_v44 }
 0x3d0   : > { %2382 = vpow2.f32 %v894_v46 }
 0x3d8   : > { %v2381_v47 = vpop.eup %2380 }
 0x3d9   : > { %v896_v63 = vsel %vm836_vm2, %v2381_v47, 0.0 }
 0x3da   : > { %v2383_v48 = vpop.eup %2382 }
 0x3db   : > { %v902_v49 = vpack.c.bf16 %v2383_v48, %v2381_v47  ;;  %v899_v50 = vsel %vm836_vm2, %v2383_v48, 0.0 }
 0x3dd   : > { %2193 = vmatmul.mubr.msk.bf16.vlgmr.msra.gmra.mrb[4].mxu1 %vm836_vm2, %v902_v49 }
 0x3de   : > { %2204 = vmatprep.mubr.msk.bf16.mxu1 %vm2542_vm1, %v2541_v25 }
 0x3e8   : > { %900 = vadd.xlane.f32.xlu0 %v899_v50 }
 0x43c   : > { %v1009_v51 = vpop.xlane.xlu0 %1008 }
 0x43d   : > { %v1013_v52 = vsub.f32 %v1000_v35, %v1009_v51 }
 0x43e   : > { %v1012_v53 = vpop.xlane.xlu1 %1011 }
 0x43f   : > { %v1015_v54 = vmul.f32 1.442695, %v1013_v52  ;;  %v1014_v55 = vsub.f32 %v1003_v38, %v1012_v53 }
 0x440   : > { %v1028_v56 = vpop.permute.xlu0 %1027 }
 0x441   : > { %2384 = vpow2.f32 %v1015_v54  ;;  %v1017_v57 = vmul.f32 1.442695, %v1014_v55  ;;  %2203 = vmatpush3.bf16.msra.mxu1 %v1028_v56 }
 0x442   : > { %2214 = vmatprep.subr.bf16.mxu1 %v2541_v25 }
 0x443   : > { %2386 = vpow2.f32 %v1017_v57 }
 0x444   : > { %v1183_v10 = vpop.permute.xlu0 %1182 }
 0x44b   : > { %v2385_v58 = vpop.eup %2384 }
 0x44c   : > { %v1019_v59 = vsel %vm836_vm2, %v2385_v58, 0.0 }
 0x44d   : > { %v2387_v60 = vpop.eup %2386  ;;  %1020 = vadd.xlane.f32.xlu1 %v1019_v59 }
 0x44e   : > { %v1025_v61 = vpack.c.bf16 %v2387_v60, %v2385_v58  ;;  %v1022_v62 = vsel %vm836_vm2, %v2387_v60, 0.0 }
 0x450   : > { %2205 = vmatmul.mubr.msk.bf16.vlgmr.msra.gmra.mrb[8].mxu1 %vm836_vm2, %v1025_v61 }
 0x451   : > { %1023 = vadd.xlane.f32.xlu1 %v1022_v62  ;;  %2216 = vmatprep.mubr.msk.bf16.mxu1 %vm2542_vm1, %v2541_v25  ;;  %v2342_v62 = vld [vmem:[%s3125_s6 + $0x10] sm:$0xff]  }
 0x452   : > { %2215 = vmatpush3.bf16.msra.mxu1 %v2340_v2 }
 0x453   : > { %2226 = vmatprep.subr.bf16.mxu1 %v2541_v25 }
 0x462   : > { %1184 = vrot.lane.b32.xlu1 %v2851_v18, %s2544_s21 }
 0x475   : > { %v901_v12 = vpop.xlane.xlu0 %900 }
 0x476   : > { %2388 = vrcp.f32 %v901_v12 }
 0x480   : > { %v2389_v14 = vpop.eup %2388 }
 0x486   : > { %897 = vadd.xlane.f32.xlu1 %v896_v63 }
 0x497   : > { %1252 = vrot.lane.b32.xlu1 %v2849_v17, %s2544_s21  ;;  %s499_s21 = scalar_lea.vmem [#allocation7], %s2010_s19 }
 0x49b   : > { %1359 = vrot.lane.b32.xlu1 %v2860_v23, %s2545_s13 }
 0x4b0   : > { %v940_v4 = vpop.f32.mrb[4].mxu1 }
 0x4b1   : > { %v2194_v5 = vpop.f32.mrb[5].mxu1 }
 0x4b2   : > { %v943_v6 = vpop.f32.mrb[6].mxu1 }
 0x4b3   : > { %v2195_v7 = vpop.f32.mrb[7].mxu1  ;;  %v950_v16 = vmul.f32 %v2389_v14, %v943_v6 }
 0x4da   : > { %v1021_v8 = vpop.xlane.xlu1 %1020 }
 0x4de   : > { %v1024_v9 = vpop.xlane.xlu1 %1023 }
 0x4e2   : > { %v1185_v11 = vpop.permute.xlu1 %1184 }
 0x4e3   : > { %v1190_v32 = vsel %vm836_vm2, %v1185_v11, 0 }
 0x513   : > { %v898_v13 = vpop.xlane.xlu1 %897 }
 0x514   : > { %2390 = vrcp.f32 %v898_v13 }
 0x515   : > { %2392 = vrcp.f32 %v1021_v8 }
 0x516   : > { %2394 = vrcp.f32 %v1024_v9 }
 0x517   : > { %v1253_v21 = vpop.permute.xlu1 %1252 }
 0x51b   : > { %v1360_v61 = vpop.permute.xlu1 %1359 }
 0x51e   : > { %v2391_v15 = vpop.eup %2390 }
 0x51f   : > { %v949_v19 = vmul.f32 %v2391_v15, %v940_v4  ;;  %v2393_v23 = vpop.eup %2392 }
 0x520   : > { %v2395_v26 = vpop.eup %2394 }
 0x521   : > { %v951_v20 = vpack.c.bf16 %v950_v16, %v949_v19 }
 0x523   : > { %v1067_v22 = vpop.f32.mrb[8].mxu1  ;;  %2217 = vmatmul.mubr.msk.bf16.vlgmr.msra.gmra.mrb[12].mxu1 %vm836_vm2, %v951_v20 }
 0x524   : > { %2227 = vmatpush3.bf16.msra.mxu1 %v1253_v21  ;;  %v2206_v24 = vpop.f32.mrb[9].mxu1  ;;  %2228 = vmatprep.mubr.msk.bf16.mxu1 %vm2542_vm1, %v2541_v25  ;;  %v1076_v28 = vmul.f32 %v2393_v23, %v1067_v22 }
 0x525   : > { %v1070_v27 = vpop.f32.mrb[10].mxu1  ;;  %2238 = vmatprep.subr.bf16.mxu1 %v2541_v25 }
 0x526   : > { %v1077_v29 = vmul.f32 %v2395_v26, %v1070_v27  ;;  %v2207_v30 = vpop.f32.mrb[11].mxu1 }
 0x528   : > { %v1078_v31 = vpack.c.bf16 %v1077_v29, %v1076_v28 }
 0x52a   : > { %2211 = vmatmul.mubr.msk.bf16.vlgmr.msra.gmra.mrb[16].mxu0 %vm836_vm2, %v1078_v31 }
 0x52b   : > { %2221 = vmatpush3.bf16.xpose.msra.mxu0 %v1190_v32  ;;  %2222 = vmatprep.mubr.msk.bf16.mxu0 %vm2542_vm1, %v2541_v25 }
 0x52c   : > { %2232 = vmatprep.subr.bf16.mxu0 %v2541_v25 }
 0x532   : > { %2223 = vmatmul.mubr.msk.bf16.vlgmr.msra.gmra.mrb[20].mxu0 %vm836_vm2, %v1183_v10 }
 0x533   : > { %2234 = vmatprep.mubr.msk.bf16.mxu0 %vm2542_vm1, %v2541_v25  ;;  %2233 = vmatpush3.bf16.msra.mxu0 %v2342_v62 }
 0x534   : > { %2244 = vmatprep.subr.bf16.mxu0 %v2541_v25 }
 0x5f6   : > { %v1175_v33 = vpop.f32.mrb[12].mxu1 }
 0x5f7   : > { %v2218_v34 = vpop.f32.mrb[13].mxu1 }
 0x5f8   : > { %v1178_v35 = vpop.f32.mrb[14].mxu1 }
 0x5f9   : > { %v2219_v36 = vpop.f32.mrb[15].mxu1 }
 0x5fd   : > { %v1125_v37 = vpop.f32.mrb[16].mxu0 }
 0x5fe   : > { %v2918_v38 = vadd.f32 %v1175_v33, %v1125_v37  ;;  %v2212_v39 = vpop.f32.mrb[17].mxu0  ;;  %v2343_v37 = vld [vmem:[%s3125_s6 + $0x18] sm:$0xff]  }
 0x5ff   : > { %v1128_v40 = vpop.f32.mrb[18].mxu0 }
 0x600   : > { %v2920_v41 = vadd.f32 %v1178_v35, %v1128_v40  ;;  %v2213_v42 = vpop.f32.mrb[19].mxu0 }
 0x605   : > { %v1226_v43 = vpop.f32.mrb[20].mxu0 }
 0x606   : > { %v2224_v44 = vpop.f32.mrb[21].mxu0  ;;  %v1233_v45 = vsel %vm836_vm2, %v1226_v43, -inf }
 0x607   : > { %1234 = vmax.xlane.f32.xlu0 %v1233_v45  ;;  %v1229_v46 = vpop.f32.mrb[22].mxu0 }
 0x608   : > { %v2225_v47 = vpop.f32.mrb[23].mxu0  ;;  %v1236_v48 = vsel %vm836_vm2, %v1229_v46, -inf }
 0x60b   : > { %1237 = vmax.xlane.f32.xlu0 %v1236_v48 }
 0x621   : > { %1361 = vrot.lane.b32.xlu0 %v2851_v18, %s2545_s13 }
 0x694   : > { %v1235_v49 = vpop.xlane.xlu0 %1234 }
 0x695   : > { %v1239_v50 = vsub.f32 %v1226_v43, %v1235_v49 }
 0x697   : > { %v1241_v51 = vmul.f32 1.442695, %v1239_v50 }
 0x698   : > { %v1238_v52 = vpop.xlane.xlu0 %1237 }
 0x699   : > { %2396 = vpow2.f32 %v1241_v51  ;;  %v1240_v53 = vsub.f32 %v1229_v46, %v1238_v52  ;;  %v2049_v52 = vld [vmem:[%s3126_s7] ss:$0 sm:$0xff] }
 0x69b   : > { %v1243_v54 = vmul.f32 1.442695, %v1240_v53 }
 0x69c   : > { %v1362_v58 = vpop.permute.xlu0 %1361 }
 0x69d   : > { %2398 = vpow2.f32 %v1243_v54  ;;  %v1367_v18 = vsel %vm836_vm2, %v1362_v58, 0 }
 0x6a3   : > { %v2397_v55 = vpop.eup %2396 }
 0x6a4   : > { %v1245_v56 = vsel %vm836_vm2, %v2397_v55, 0.0 }
 0x6a5   : > { %1246 = vadd.xlane.f32.xlu1 %v1245_v56 }
 0x6a7   : > { %v2399_v57 = vpop.eup %2398 }
 0x6a8   : > { %v1248_v59 = vsel %vm836_vm2, %v2399_v57, 0.0  ;;  %v1251_v60 = vpack.c.bf16 %v2399_v57, %v2397_v55 }
 0x6a9   : > { %1249 = vadd.xlane.f32.xlu0 %v1248_v59 }
 0x6aa   : > { %2229 = vmatmul.mubr.msk.bf16.vlgmr.msra.gmra.mrb[16].mxu1 %vm836_vm2, %v1251_v60 }
 0x6ab   : > { %2239 = vmatpush3.bf16.xpose.msra.mxu1 %v1367_v18  ;;  %2240 = vmatprep.mubr.msk.bf16.mxu1 %vm2542_vm1, %v2541_v25 }
 0x6ac   : > { %2250 = vmatprep.subr.bf16.mxu1 %v2541_v25 }
 0x6b2   : > { %2241 = vmatmul.mubr.msk.bf16.vlgmr.msra.gmra.mrb[20].mxu1 %vm836_vm2, %v1360_v61 }
 0x6b3   : > { %2252 = vmatprep.mubr.msk.bf16.mxu1 %vm2542_vm1, %v2541_v25  ;;  %2251 = vmatpush3.bf16.msra.mxu1 %v2343_v37 }
 0x732   : > { %v1247_v63 = vpop.xlane.xlu1 %1246 }
 0x733   : > { %2400 = vrcp.f32 %v1247_v63 }
 0x736   : > { %v1250_v2 = vpop.xlane.xlu0 %1249 }
 0x737   : > { %2402 = vrcp.f32 %v1250_v2 }
 0x73d   : > { %v2401_v4 = vpop.eup %2400 }
 0x741   : > { %v2403_v6 = vpop.eup %2402 }
 0x77d   : > { %v1292_v3 = vpop.f32.mrb[16].mxu1 }
 0x77e   : > { %v2230_v5 = vpop.f32.mrb[17].mxu1  ;;  %v1301_v8 = vmul.f32 %v2401_v4, %v1292_v3 }
 0x77f   : > { %v1295_v7 = vpop.f32.mrb[18].mxu1 }
 0x780   : > { %v1302_v9 = vmul.f32 %v2403_v6, %v1295_v7  ;;  %v2231_v10 = vpop.f32.mrb[19].mxu1  ;;  %v2346_v7 = vld [vmem:[%s3129_s10 + $0x4] ss:$8 sps:$4 sm:$0xff]  }
 0x781   : > { %v2347_v10 = vld [vmem:[%s3129_s10 + $0x10] ss:$8 sps:$4 sm:$0xff]  }
 0x782   : > { %v1303_v11 = vpack.c.bf16 %v1302_v9, %v1301_v8  ;;  %v2344_v8 = vld [vmem:[%s3129_s10] ss:$8 sps:$4 sm:$0xff]   ;;  %v2349_v9 = vld [vmem:[%s3129_s10 + $0x14] ss:$8 sps:$4 sm:$0xff]  }
 0x784   : > { %2235 = vmatmul.mubr.msk.bf16.vlgmr.msra.gmra.mrb[24].mxu0 %vm836_vm2, %v1303_v11  ;;  %v2352_v11 = vld [vmem:[%s3129_s10 + $0x24] ss:$8 sps:$4 sm:$0xff]  }
 0x785   : > { %v1403_v12 = vpop.f32.mrb[20].mxu1  ;;  %2246 = vmatprep.mubr.msk.bf16.mxu0 %vm2542_vm1, %v2541_v25 }
 0x786   : > { %v2242_v13 = vpop.f32.mrb[21].mxu1  ;;  %v1410_v14 = vsel %vm836_vm2, %v1403_v12, -inf }
 0x787   : > { %1411 = vmax.xlane.f32.xlu0 %v1410_v14  ;;  %v1406_v15 = vpop.f32.mrb[22].mxu1  ;;  %v2353_v13 = vld [vmem:[%s3129_s10 + $0x30] ss:$8 sps:$4 sm:$0xff]   ;;  %v2355_v14 = vld [vmem:[%s3129_s10 + $0x34] ss:$8 sps:$4 sm:$0xff]  }
 0x788   : > { %v2243_v16 = vpop.f32.mrb[23].mxu1  ;;  %v1413_v19 = vsel %vm836_vm2, %v1406_v15, -inf }
 0x789   : > { %1414 = vmax.xlane.f32.xlu1 %v1413_v19  ;;  %v2356_v16 = vld [vmem:[%s3131_s12 + $0x40] sm:$0xff]  }
 0x78a   : > { %v2357_v19 = vld [vmem:[%s3131_s12] sm:$0xff]   ;;  %2126 = vmatprep.subr.bf16.mxu1 %v2356_v16 }
 0x79d   : > { %1429 = vrot.lane.b32.xlu0 %v2849_v17, %s2545_s13  ;;  %s1916_s13 = sshll.u32 %s499_s21, 4  ;;  %s3067_s13 = int_to_ptr.vmem [resolvable:$true] %s1916_s13 }
 0x79e   : > { %s2454_s19 = scalar_lea.vmem %s3067_s13, 256  ;;  %p2461_p6 = scmp.lt.s32.totalorder %s3067_s13, %s2459_s14 }
 0x79f   : > { %p2455_p8 = scmp.ne.s32.totalorder %s3067_s13, %s2454_s19 }
 0x7a1   : > { %p2456_p11 = pnand %p2455_p8, %p3153_p9 }
 0x7a3   : > { %p2457_p0 = pneg %p2456_p11 }
 0x814   : > { %v1412_v20 = vpop.xlane.xlu0 %1411 }
 0x815   : > { %v1416_v21 = vsub.f32 %v1403_v12, %v1412_v20  ;;  %v2350_v12 = vld [vmem:[%s3129_s10 + $0x20] ss:$8 sps:$4 sm:$0xff]  }
 0x816   : > { %v1415_v22 = vpop.xlane.xlu1 %1414  ;;  %v2358_v20 = vld [vmem:[%s3131_s12 + $0x48] sm:$0xff]  }
 0x817   : > { %v1418_v23 = vmul.f32 1.442695, %v1416_v21  ;;  %v1417_v24 = vsub.f32 %v1406_v15, %v1415_v22  ;;  %v2546_v15 = vmov 0   ;;  %v2359_v21 = vld [vmem:[%s3131_s12 + $0x8] sm:$0xff]  }
 0x818   : > { %v1430_v26 = vpop.permute.xlu0 %1429 }
 0x819   : > { %2404 = vpow2.f32 %v1418_v23  ;;  %v1420_v25 = vmul.f32 1.442695, %v1417_v24  ;;  %2245 = vmatpush3.bf16.msra.mxu0 %v1430_v26 }
 0x81a   : > { %1655 = vmatprep.subr.bf16.mxu0 %v2346_v7 }
 0x81b   : > { %2406 = vpow2.f32 %v1420_v25 }
 0x823   : > { %v2405_v27 = vpop.eup %2404 }
 0x824   : > { %v1422_v28 = vsel %vm836_vm2, %v2405_v27, 0.0 }
 0x825   : > { %v2407_v29 = vpop.eup %2406  ;;  %1423 = vadd.xlane.f32.xlu1 %v1422_v28 }
 0x826   : > { %v1428_v30 = vpack.c.bf16 %v2407_v29, %v2405_v27  ;;  %v1425_v17 = vsel %vm836_vm2, %v2407_v29, 0.0 }
 0x828   : > { %2247 = vmatmul.mubr.msk.bf16.vlgmr.msra.gmra.mrb[28].mxu0 %vm836_vm2, %v1428_v30  ;;  %v2050_v30 = vld [vmem:[%s3127_s8] ss:$0 sm:$0xff] }
 0x829   : > { %1426 = vadd.xlane.f32.xlu1 %v1425_v17  ;;  %1656 = vmatpush1.bf16.msra.mxu0 %v2344_v8 }
 0x82a   : > { %1657 = vmatprep.subr.bf16.mxu0 %v2349_v9  ;;  %1687 = vmatprep.mubr.bf16.mxu0 %v2546_v15 }
 0x82d   : > { %1658 = vmatpush1.bf16.msra.mxu0 %v2347_v10 }
 0x82e   : > { %1659 = vmatprep.subr.bf16.mxu0 %v2352_v11 }
 0x831   : > { %1660 = vmatpush1.bf16.msra.mxu0 %v2350_v12 }
 0x832   : > { %1661 = vmatprep.subr.bf16.mxu0 %v2355_v14 }
 0x835   : > { %1662 = vmatpush1.bf16.msra.mxu0 %v2353_v13 }
 0x857   : > { %v1350_v31 = vpop.f32.mrb[24].mxu0 }
 0x858   : > { %v1357_v32 = vadd.f32 %v1350_v31, %v2918_v38  ;;  %v2236_v33 = vpop.f32.mrb[25].mxu0 }
 0x859   : > { %v1353_v34 = vpop.f32.mrb[26].mxu0  ;;  %v2051_v33 = vld [vmem:[%s3128_s9] ss:$0 sm:$0xff] }
 0x85a   : > { %v1358_v35 = vadd.f32 %v1353_v34, %v2920_v41  ;;  %v2237_v36 = vpop.f32.mrb[27].mxu0 }
 0x8b2   : > { %v1424_v39 = vpop.xlane.xlu1 %1423 }
 0x8b3   : > { %2408 = vrcp.f32 %v1424_v39  ;;  %v2360_v39 = vld [vmem:[%s3131_s12 + $0x50] sm:$0xff]  }
 0x8b6   : > { %v1427_v40 = vpop.xlane.xlu1 %1426 }
 0x8b7   : > { %2410 = vrcp.f32 %v1427_v40  ;;  %v2361_v40 = vld [vmem:[%s3131_s12 + $0x10] sm:$0xff]  }
 0x8bd   : > { %v2409_v43 = vpop.eup %2408 }
 0x8c1   : > { %v2411_v45 = vpop.eup %2410 }
 0x8fb   : > { %v1469_v42 = vpop.f32.mrb[28].mxu0 }
 0x8fc   : > { %v2248_v44 = vpop.f32.mrb[29].mxu0  ;;  %v1478_v38 = vmul.f32 %v2409_v43, %v1469_v42  ;;  %v2362_v42 = vld [vmem:[%s3131_s12 + $0x58] sm:$0xff]  }
 0x8fd   : > { %v1472_v46 = vpop.f32.mrb[30].mxu0  ;;  %v2363_v43 = vld [vmem:[%s3131_s12 + $0x18] sm:$0xff]   ;;  %v2364_v44 = vld [vmem:[%s3131_s12 + $0x60] sm:$0xff]  }
 0x8fe   : > { %v1479_v47 = vmul.f32 %v2411_v45, %v1472_v46  ;;  %v2249_v48 = vpop.f32.mrb[31].mxu0  ;;  %v2365_v45 = vld [vmem:[%s3131_s12 + $0x20] sm:$0xff]   ;;  %v2366_v46 = vld [vmem:[%s3131_s12 + $0x68] sm:$0xff]  }
 0x8ff   : > { %v2369_v48 = vld [vmem:[%s3131_s12 + $0x30] sm:$0xff]  }
 0x900   : > { %v1480_v49 = vpack.c.bf16 %v1479_v47, %v1478_v38  ;;  %v2367_v38 = vld [vmem:[%s3131_s12 + $0x28] sm:$0xff]   ;;  %v2368_v47 = vld [vmem:[%s3131_s12 + $0x70] sm:$0xff]  }
 0x902   : > { %2253 = vmatmul.mubr.msk.bf16.vlgmr.msra.gmra.mrb[24].mxu1 %vm836_vm2, %v1480_v49  ;;  %v2370_v49 = vld [vmem:[%s3131_s12 + $0x78] sm:$0xff]  }
 0x903   : > { %2127 = vmatpush3.bf16.msra.mxu1 %v2357_v19 }
 0x904   : > { %2128 = vmatprep.subr.bf16.mxu1 %v2358_v20 }
 0x907   : > { %2129 = vmatpush3.bf16.msra.mxu1 %v2359_v21 }
 0x908   : > { %2130 = vmatprep.subr.bf16.mxu1 %v2360_v39 }
 0x90b   : > { %2131 = vmatpush3.bf16.msra.mxu1 %v2361_v40 }
 0x90c   : > { %2132 = vmatprep.subr.bf16.mxu1 %v2362_v42 }
 0x90f   : > { %2133 = vmatpush3.bf16.msra.mxu1 %v2363_v43 }
 0x910   : > { %2134 = vmatprep.subr.bf16.mxu1 %v2364_v44 }
 0x913   : > { %2135 = vmatpush3.bf16.msra.mxu1 %v2365_v45 }
 0x914   : > { %2136 = vmatprep.subr.bf16.mxu1 %v2366_v46 }
 0x917   : > { %2137 = vmatpush3.bf16.msra.mxu1 %v2367_v38 }
 0x918   : > { %2138 = vmatprep.subr.bf16.mxu1 %v2368_v47 }
 0x91b   : > { %2139 = vmatpush3.bf16.msra.mxu1 %v2369_v48 }
 0x91c   : > { %2140 = vmatprep.subr.bf16.mxu1 %v2370_v49 }
 0x9d5   : > { %v1527_v41 = vpop.f32.mrb[24].mxu1 }
 0x9d6   : > { %v1534_v50 = vadd.f32 %v1527_v41, %v1357_v32  ;;  %v2254_v51 = vpop.f32.mrb[25].mxu1  ;;  %v2371_v41 = vld [vmem:[%s3131_s12 + $0x38] sm:$0xff]  }
 0x9d7   : > { %v1530_v53 = vpop.f32.mrb[26].mxu1  ;;  %2141 = vmatpush3.bf16.msra.mxu1 %v2371_v41 }
 0x9d8   : > { %v1536_v54 = vadd.f32 %v1534_v50, %v2747_v0  ;;  %v1535_v55 = vadd.f32 %v1530_v53, %v1358_v35  ;;  %v2255_v56 = vpop.f32.mrb[27].mxu1  ;;  %v539_v50 = vlaneseq  ;;  %v1600_v53 = vld [vmem:[%s3130_s11] sm:$0x3] }
 0x9da   : > { %v2960_v57 = vadd.f32 %v2049_v52, %v1536_v54  ;;  %v1537_v58 = vadd.f32 %v1535_v55, %v2749_v1  ;;  %v540_v51 = vshrl.u32 %v539_v50, 7 }
 0x9dc   : > { %v2963_v59 = vadd.f32 %v2049_v52, %v1537_v58  ;;  %v1549_v60 = vsel %vm510_vm0, %v2960_v57, 0.0  ;;  %v541_v52 = vsub.s32 0, %v540_v51  ;;  %v1608_v54 = vsub.s32 1, %v540_v51 }
 0x9dd   : > { %1550 = vadd.xlane.f32.xlu1 %v1549_v60 }
 0x9de   : > { %v1552_v18 = vsel %vm510_vm0, %v2963_v59, 0.0  ;;  %v1605_v55 = vrot.slane %v1600_v53, %v541_v52  ;;  %v1609_v56 = vrot.slane %v1600_v53, %v1608_v54 }
 0x9e1   : > { %1553 = vadd.xlane.f32.xlu1 %v1552_v18 }
 0xa6a   : > { %v1551_v61 = vpop.xlane.xlu1 %1550 }
 0xa6b   : > { %v1555_v62 = vmul.f32 0.015625, %v1551_v61 }
 0xa6d   : > { %v1557_v0 = vsub.f32 %v2960_v57, %v1555_v62 }
 0xa6e   : > { %v1554_v63 = vpop.xlane.xlu1 %1553 }
 0xa6f   : > { %v1556_v2 = vmul.f32 0.015625, %v1554_v63  ;;  %v1559_v3 = vmul.f32 %v1557_v0, %v1557_v0 }
 0xa71   : > { %v1558_v4 = vsub.f32 %v2963_v59, %v1556_v2  ;;  %v1561_v1 = vsel %vm510_vm0, %v1559_v3, 0.0 }
 0xa72   : > { %1562 = vadd.xlane.f32.xlu1 %v1561_v1 }
 0xa73   : > { %v1560_v5 = vmul.f32 %v1558_v4, %v1558_v4 }
 0xa75   : > { %v1564_v6 = vsel %vm510_vm0, %v1560_v5, 0.0 }
 0xa76   : > { %1565 = vadd.xlane.f32.xlu1 %v1564_v6 }
 0xaff   : > { %v1563_v22 = vpop.xlane.xlu1 %1562 }
 0xb00   : > { %v1567_v23 = vmul.f32 0.015625, %v1563_v22 }
 0xb02   : > { %v1569_v24 = vadd.f32 1e-05, %v1567_v23 }
 0xb03   : > { %v1566_v26 = vpop.xlane.xlu1 %1565 }
 0xb04   : > { %2412 = vrsqrt.f32 %v1569_v24  ;;  %v1568_v25 = vmul.f32 0.015625, %v1566_v26 }
 0xb06   : > { %v1570_v27 = vadd.f32 1e-05, %v1568_v25 }
 0xb08   : > { %2414 = vrsqrt.f32 %v1570_v27  ;;  %v2061_v27 = vld [vmem:[%s3151_s23] ss:$0 sm:$0xff]  ;;  %s2460_s23 = scalar_lea.vmem %s2459_s14, 512 }
 0xb09   : > { %p2462_p13 = scmp.lt.s32.totalorder %s2460_s23, %s2454_s19 }
 0xb0b   : > { %p2463_p2 = por %p2462_p13, %p2461_p6 }
 0xb0d   : > { %p2464_p5 = pnand %p2463_p2, %p2457_p0 }
 0xb0e   : > { %v2413_v28 = vpop.eup %2412 }
 0xb0f   : > { %v1573_v29 = vmul.f32 %v2413_v28, %v1557_v0 }
 0xb11   : > { %v1581_v31 = vmul.f32 %v2050_v30, %v1573_v29 }
 0xb12   : > { %v2415_v17 = vpop.eup %2414 }
 0xb13   : > { %v1574_v32 = vmul.f32 %v2415_v17, %v1558_v4  ;;  %v1589_v35 = vadd.f32 %v2051_v33, %v1581_v31 }
 0xb15   : > { %v1582_v34 = vmul.f32 %v2050_v30, %v1574_v32 }
 0xb17   : > { %v1590_v36 = vadd.f32 %v2051_v33, %v1582_v34 }
 0xb19   : > { %v1591_v37 = vpack.c.bf16 %v1590_v36, %v1589_v35 }
 0xb1b   : > { %2060 = vmatmul.mubr.msk.bf16.vlgmr.msra.gmra.mrb[32].mxu0 %vm510_vm0, %v1591_v37 }
 0xbee   : > { %v1689_v58 = vpop.f32.mrb[32].mxu0 }
 0xbef   : > { %v1690_v60 = vadd.f32 %v1689_v58, %v1605_v55  ;;  %v1691_v18 = vpop.f32.mrb[33].mxu0 }
 0xbf0   : > { %v1692_v61 = vadd.f32 %v1691_v18, %v1609_v56  ;;  %v1693_v62 = vpop.f32.mrb[34].mxu0 }
 0xbf1   : > { %v1702_v0 = vmul.f32 0.70710677, %v1690_v60  ;;  %v1694_v63 = vadd.f32 %v1693_v62, %v1605_v55  ;;  %v1695_v2 = vpop.f32.mrb[35].mxu0  ;;  %v1698_v12 = vmul.f32 0.5, %v1690_v60 }
 0xbf2   : > { %v1703_v3 = vmul.f32 0.70710677, %v1692_v61  ;;  %v1696_v4 = vadd.f32 %v1695_v2, %v1609_v56  ;;  %v1699_v15 = vmul.f32 0.5, %v1692_v61 }
 0xbf3   : > { %2416 = verf.f32 %v1702_v0  ;;  %v1704_v1 = vmul.f32 0.70710677, %v1694_v63  ;;  %v1700_v13 = vmul.f32 0.5, %v1694_v63 }
 0xbf4   : > { %2418 = verf.f32 %v1703_v3  ;;  %v1705_v5 = vmul.f32 0.70710677, %v1696_v4  ;;  %v1701_v16 = vmul.f32 0.5, %v1696_v4 }
 0xbf5   : > { %2420 = verf.f32 %v1704_v1 }
 0xbf6   : > { %2422 = verf.f32 %v1705_v5 }
 0xbfd   : > { %v2417_v6 = vpop.eup %2416 }
 0xbfe   : > { %v2419_v7 = vpop.eup %2418  ;;  %v1710_v8 = vadd.f32 1.0, %v2417_v6 }
 0xbff   : > { %v2421_v9 = vpop.eup %2420  ;;  %v1711_v10 = vadd.f32 1.0, %v2419_v7 }
 0xc00   : > { %v2423_v11 = vpop.eup %2422  ;;  %v1712_v14 = vadd.f32 1.0, %v2421_v9  ;;  %v1714_v20 = vmul.f32 %v1710_v8, %v1698_v12 }
 0xc01   : > { %v1713_v19 = vadd.f32 1.0, %v2423_v11  ;;  %v1715_v22 = vmul.f32 %v1711_v10, %v1699_v15 }
 0xc02   : > { %v1716_v21 = vmul.f32 %v1712_v14, %v1700_v13 }
 0xc03   : > { %v1717_v23 = vmul.f32 %v1713_v19, %v1701_v16 }
 0xc04   : > { %v1718_v24 = vpack.c.bf16 %v1716_v21, %v1714_v20 }
 0xc05   : > { %v1719_v26 = vpack.c.bf16 %v1717_v23, %v1715_v22 }
 0xc07   : > { %1887 = vmatprep.mubr.bf16.mxu1 %v1719_v26 }
 0xc08   : > { %1888 = vmatmul.mubr.bf16.vlgmr.msra.gmra.mrb[28].mxu1 %v1718_v24 }
 0xcdb   : > { %v2142_v25 = vpop.f32.mrb[28].mxu1 }
 0xcdc   : > { %v2143_v28 = vpop.f32.mrb[29].mxu1 }
 0xcdd   : > { %v2144_v29 = vadd.f32 %v2143_v28, %v2142_v25  ;;  %v2145_v30 = vpop.f32.mrb[30].mxu1 }
 0xcde   : > { %v2146_v17 = vpop.f32.mrb[31].mxu1 }
 0xcdf   : > { %v1890_v31 = vadd.f32 %v2144_v29, %v2061_v27  ;;  %v2147_v32 = vadd.f32 %v2146_v17, %v2145_v30 }
 0xce1   : > { %v1896_v33 = vadd.f32 %v1890_v31, %v2960_v57  ;;  %v1893_v34 = vadd.f32 %v2147_v32, %v2061_v27 }
 0xce3   : > { %1898 = vst.msk [vmem:[%s499_s21] sm:$0xff] %vm510_vm0, %v1896_v33  ;;  %v1897_v35 = vadd.f32 %v1893_v34, %v2963_v59 }
 0xce5   : > { %1899 = vst.msk [vmem:[%s499_s21 + $0x8] sm:$0xff] %vm510_vm0, %v1897_v35 }
 0xce6   : > { %2467 = shalt.err (!%p2464_p5)
}
 0xce7   : > { %s2468_s29 = scalar_lea.hbm %s3065_s22, 256  ;;  %s2472_s25 = scalar_lea.hbm %s3152_s27, 512 }
 0xce8   : > { %p2469_p4 = scmp.ne.s32.totalorder %s3065_s22, %s2468_s29  ;;  %p2473_p12 = scmp.lt.u32.totalorder %s3065_s22, %s3152_s27 }
 0xce9   : > { %p2474_p1 = scmp.lt.u32.totalorder %s2472_s25, %s2468_s29  ;;  %p2476_p8 = scmp.lt.u32.totalorder %s2468_s29, %s3065_s22 }
 0xcea   : > { %p2470_p7 = pnand %p2469_p4, %p3153_p9 }
 0xceb   : > { %p2475_p3 = por %p2474_p1, %p2473_p12 }
 0xcec   : > { %p2471_p10 = pneg %p2470_p7 }
 0xced   : > { %p2477_p11 = por %p2476_p8, %p2475_p3 }
 0xcef   : > { %p2478_p0 = pnand %p2477_p11, %p2471_p10 }
 0xcf1   : > { %2481 = shalt.err (!%p2478_p0)
}
 0xcf2   : > { %s2548_s19 = smov 128   ;;  %s2549_s23 = smov 8  }
 0xcf3   : > { %2258 = dma.vmem_to_hbm [thread:$0]  (%p3153_p9), %s3067_s13, 256, %s3065_s22, %s1901_s16, %s2548_s19, %s2548_s19, %s2549_s23  }
 0xcf4 PF: > { %s3154_s21 = sld [smem:[#allocation10_spill]]  ;;  %p3155_p6 = scmp.ne.s32.totalorder %s3148_s28, 0 }
 0xcf5   : > { %p3156_p13 = scmp.ge.s32.totalorder %s2536_s18, 2 }
 0xcf7   : > { %p2265_p2 = pnand %p3156_p13, %p3155_p6 }
 0xcfa   : > { %s1931_s17 = sand.u32 1, %s3154_s21  }
 0xcfb   : > { %s1932_s29 = scalar_lea.sflag [#allocation6], %s1931_s17 }
 0xcfc   : > { %2511 = dma.done.wait (!%p2265_p2), %s1932_s29, 256  }
 0xcfd   : > { %2513 = vsyncadd (!%p2265_p2), %s1932_s29, 4294967040  ;;  %s30_s18 = sadd.s32 1, %s2536_s18   ;;  %s3157_s25 = sld [smem:[#allocation13_spill]] }
 0xcfe   : > { %p27_p5 = scmp.ge.s32.totalorder %s30_s18, 4   ;;  %s3158_s16 = sld [smem:[#allocation11_spill]] }
 0xcff   : > { %s3159_s17 = sld [smem:[#allocation12_spill]]  ;;  %s3160_s29 = smov %s2520_s30 }
 0xd00   : > { %s3161_s30 = smov %s2524_s15  ;;  %29 = sbr.rel (!%p27_p5) target bundleno = 9 (0x9), region = 129 }
 0xd03   : > { %s3162_s15 = smov %s3157_s25 }
 0xd07   :  { %1937 = vsyncpa [#allocation5], 1 }
 0xd08   :  { %1939 = vsyncpa [#allocation5 + $0x1], 1 }
 0xd09   :  { %1940 = vsyncpa [#allocation6], 1 }
 0xd0a   :  { %1942 = vsyncpa [#allocation6 + $0x1], 1 }

</bundles_post_ra>
